<compile_context>
chip_gen: v7x
topology: tpu7x:2x2x1
jax: 0.10.0
libtpu: 0.0.40
codegen_flags: <defaults>
</compile_context>

<pallas_src>
import jax
import jax.numpy as jnp
from jax.experimental import pallas as pl
from jax.experimental.pallas import tpu as pltpu

IN_FEAT = 9
HIDDEN = 64
OUT_FEAT = 6
OUT_PAD = 128          # lane-dense padded output width (first OUT_FEAT cols valid)
NEG_BIG = -1e30        # f32 pad bias -> exp underflows to exactly 0 in the softmax

# PyTorch gate blocks are [i, f, g, o]; kernel uses [i, f, o, g] so one sigmoid
# covers the first 3*H fused-gate lanes and one tanh covers the last H lanes.
_GATE_ORDER = (0, 1, 3, 2)


# --------------------------- fused network kernel ---------------------------
def _make_fused_kernel(T, B):
    """Kernel factory; T (timesteps) and B (batch) are static."""
    H = HIDDEN

    def fused_kernel(x_ref, wih_ref, whh_ref, bg_ref,
                     w1_ref, b1_ref, w3_ref, b3_ref,
                     out_ref, xg_sc, z1_sc):
        # ---- prologue: input projection for every timestep, spilled to VMEM ----
        # (off the serial path; keeping these as values would exceed the 64-vreg file
        #  once the recurrence is unrolled)
        for t in range(T):
            xg_sc[t] = (
                jnp.dot(x_ref[t], wih_ref[...], preferred_element_type=jnp.float32)
                + bg_ref[...])                                    # (B, 4H)

        # ---- LSTM recurrence, fully unrolled (T static & small) ----
        h = jnp.zeros((B, H), jnp.float32)
        c = jnp.zeros((B, H), jnp.float32)
        for t in range(T):
            # single fused (B,64)@(64,256) recurrent matmul per step; W_hh is loaded
            # from its VMEM ref inside the loop (vld slot idle) rather than held live.
            gates = xg_sc[t] + jnp.dot(
                h, whh_ref[...], preferred_element_type=jnp.float32)   # (B, 4H)
            sig = jax.nn.sigmoid(gates[:, :3 * H])                      # [i | f | o]
            i_g = sig[:, 0:H]
            f_g = sig[:, H:2 * H]
            o_g = sig[:, 2 * H:3 * H]
            g_g = jnp.tanh(gates[:, 3 * H:])
            c = f_g * c + i_g * g_g
            h = o_g * jnp.tanh(c)
            # fc1 (+ Dropout eval identity) + ReLU per step: independent MXU work that
            # hides under the EUP sigmoid/tanh latency of the recurrence.
            z1_sc[t] = jnp.maximum(
                jnp.dot(h, w1_ref[...], preferred_element_type=jnp.float32)
                + b1_ref[...], 0.0)                               # (B, H)

        # ---- epilogue: fc3 (padded to 128 lanes; pad cols carry -1e30 bias) + softmax
        for t in range(T):
            logits = (jnp.dot(z1_sc[t], w3_ref[...],
                              preferred_element_type=jnp.float32)
                      + b3_ref[...])                              # (B, OUT_PAD)
            m = jnp.max(logits, axis=1, keepdims=True)
            e = jnp.exp(logits - m)
            out_ref[t] = e / jnp.sum(e, axis=1, keepdims=True)    # exact divide

    return fused_kernel


# ------------------------------- wrapper ------------------------------------
def network_forward(x, params):
    T, B, _ = x.shape
    out_pad = pl.pallas_call(
        _make_fused_kernel(T, B),
        out_shape=jax.ShapeDtypeStruct((T, B, OUT_PAD), jnp.float32),
        in_specs=[
            pl.BlockSpec((T, B, IN_FEAT), lambda: (0, 0, 0)),
            pl.BlockSpec((IN_FEAT, 4 * HIDDEN), lambda: (0, 0)),
            pl.BlockSpec((HIDDEN, 4 * HIDDEN), lambda: (0, 0)),
            pl.BlockSpec((1, 4 * HIDDEN), lambda: (0, 0)),
            pl.BlockSpec((HIDDEN, HIDDEN), lambda: (0, 0)),
            pl.BlockSpec((1, HIDDEN), lambda: (0, 0)),
            pl.BlockSpec((HIDDEN, OUT_PAD), lambda: (0, 0)),
            pl.BlockSpec((1, OUT_PAD), lambda: (0, 0)),
        ],
        out_specs=pl.BlockSpec((T, B, OUT_PAD), lambda: (0, 0, 0)),
        scratch_shapes=[
            pltpu.VMEM((T, B, 4 * HIDDEN), jnp.float32),   # per-step input projections
            pltpu.VMEM((T, B, HIDDEN), jnp.float32),       # per-step fc1 activations
        ],
    )(x, params["wih"], params["whh"], params["bg"],
      params["w1t"], params["b1"], params["w3p"], params["b3p"])

    # drop lane padding; row order = (t, b), matching PyTorch's out.reshape(-1, 64)
    return out_pad[..., :OUT_FEAT].reshape(T * B, OUT_FEAT)


# ------------------------ params (PyTorch layout) ----------------------------
def init_params(key):
    # Deterministic init mimicking PyTorch U(-1/sqrt(hidden), 1/sqrt(hidden)).
    ks = jax.random.split(key, 8)
    bound = 1.0 / jnp.sqrt(jnp.float32(HIDDEN))

    def u(k, shape):
        return jax.random.uniform(k, shape, jnp.float32, -bound, bound)

    return {
        "w_ih": u(ks[0], (4 * HIDDEN, IN_FEAT)),   # PyTorch weight_ih_l0, gates [i,f,g,o]
        "w_hh": u(ks[1], (4 * HIDDEN, HIDDEN)),    # PyTorch weight_hh_l0
        "b_ih": u(ks[2], (4 * HIDDEN,)),
        "b_hh": u(ks[3], (4 * HIDDEN,)),
        "w1": u(ks[4], (HIDDEN, HIDDEN)),          # fc1 Linear weight
        "b1": u(ks[5], (HIDDEN,)),
        "w3": u(ks[6], (OUT_FEAT, HIDDEN)),        # fc3 Linear weight
        "b3": u(ks[7], (OUT_FEAT,)),
    }


def prepare_params(raw):
    """Convert PyTorch-layout weights to the kernel's fused-gate / padded layout."""
    H = HIDDEN

    def fuse(m):   # (4H, K) PyTorch gate-major rows -> (K, 4H) in kernel gate order
        return jnp.concatenate([m[k * H:(k + 1) * H] for k in _GATE_ORDER], axis=0).T

    b = raw["b_ih"] + raw["b_hh"]
    bg = jnp.concatenate([b[k * H:(k + 1) * H] for k in _GATE_ORDER]).reshape(1, 4 * H)
    w3p = jnp.zeros((H, OUT_PAD), jnp.float32).at[:, :OUT_FEAT].set(raw["w3"].T)
    b3p = jnp.full((1, OUT_PAD), NEG_BIG, jnp.float32).at[0, :OUT_FEAT].set(raw["b3"])
    return {
        "wih": fuse(raw["w_ih"]),                  # (9, 256)
        "whh": fuse(raw["w_hh"]),                  # (64, 256)
        "bg": bg,                                  # (1, 256)
        "w1t": raw["w1"].T, "b1": raw["b1"].reshape(1, H),
        "w3p": w3p, "b3p": b3p,
    }


# ------------------------- pure-JAX reference --------------------------------
def network_ref(x, raw):
    T, B, _ = x.shape
    H = HIDDEN
    h = jnp.zeros((B, H), jnp.float32)
    c = jnp.zeros((B, H), jnp.float32)
    b = raw["b_ih"] + raw["b_hh"]
    outs = []
    for t in range(T):
        gates = x[t] @ raw["w_ih"].T + h @ raw["w_hh"].T + b
        i = jax.nn.sigmoid(gates[:, 0 * H:1 * H])
        f = jax.nn.sigmoid(gates[:, 1 * H:2 * H])
        g = jnp.tanh(gates[:, 2 * H:3 * H])
        o = jax.nn.sigmoid(gates[:, 3 * H:4 * H])
        c = f * c + i * g
        h = o * jnp.tanh(c)
        outs.append(h)
    hall = jnp.concatenate(outs, axis=0)                        # (T*B, H), row = t*B + b
    z1 = jnp.maximum(hall @ raw["w1"].T + raw["b1"], 0.0)
    logits = z1 @ raw["w3"].T + raw["b3"]
    return jax.nn.softmax(logits, axis=1)


# --------------------------------- main --------------------------------------
if __name__ == "__main__":
    key = jax.random.PRNGKey(0)
    k_x, k_p = jax.random.split(key)

    T, B = 8, 4                                    # small seq_len, batch
    x = jax.random.normal(k_x, (T, B, IN_FEAT), jnp.float32)
    raw = init_params(k_p)
    params = prepare_params(raw)

    out = jax.jit(network_forward)(x, params)
    out = jax.block_until_ready(out)

    assert out.shape == (T * B, OUT_FEAT)
    # softmax rows must sum to ~1 (exact divide -> tight tolerance)
    assert jnp.allclose(jnp.sum(out, axis=1), 1.0, atol=1e-5)
    # match the pure-JAX reference of the PyTorch forward pass
    ref = network_ref(x, raw)
    assert jnp.allclose(out, ref, atol=1e-4), float(jnp.max(jnp.abs(out - ref)))
    print("KERNEL_OK")
</pallas_src>

<mosaic_0001>
module attributes {stable_mosaic.version = 11 : i64} {
  func.func @fused_kernel(%arg0: memref<8x4x9xf32, #tpu.memory_space<vmem>>, %arg1: memref<9x256xf32, #tpu.memory_space<vmem>>, %arg2: memref<64x256xf32, #tpu.memory_space<vmem>>, %arg3: memref<1x256xf32, #tpu.memory_space<vmem>>, %arg4: memref<64x64xf32, #tpu.memory_space<vmem>>, %arg5: memref<1x64xf32, #tpu.memory_space<vmem>>, %arg6: memref<64x128xf32, #tpu.memory_space<vmem>>, %arg7: memref<1x128xf32, #tpu.memory_space<vmem>>, %arg8: memref<8x4x128xf32, #tpu.memory_space<vmem>>, %arg9: memref<8x4x256xf32, #tpu.memory_space<vmem>>, %arg10: memref<8x4x64xf32, #tpu.memory_space<vmem>>) attributes {dimension_semantics = [], scalar_prefetch = 0 : i64, scratch_operands = 2 : i64, tpu.core_type = #tpu.core_type<tc>} {
    %c0 = arith.constant 0 : index
    %c0_0 = arith.constant 0 : index
    %c0_1 = arith.constant 0 : index
    %0 = vector.load %arg0[%c0, %c0_0, %c0_1] : memref<8x4x9xf32, #tpu.memory_space<vmem>>, vector<1x4x9xf32>
    %1 = vector.shape_cast %0 : vector<1x4x9xf32> to vector<4x9xf32>
    %c0_2 = arith.constant 0 : index
    %c0_3 = arith.constant 0 : index
    %2 = vector.load %arg1[%c0_2, %c0_3] : memref<9x256xf32, #tpu.memory_space<vmem>>, vector<9x256xf32>
    %cst = arith.constant dense<0.000000e+00> : vector<4x256xf32>
    %3 = tpu.matmul %1, %2, %cst {dimension_numbers = #tpu.dot_dimension_numbers<[1], [0], [0], [1], [0, 0, 1, 1], [], []>} : vector<4x9xf32>, vector<9x256xf32>, vector<4x256xf32> -> vector<4x256xf32>
    %c0_4 = arith.constant 0 : index
    %c0_5 = arith.constant 0 : index
    %4 = vector.load %arg3[%c0_4, %c0_5] : memref<1x256xf32, #tpu.memory_space<vmem>>, vector<1x256xf32>
    %5 = vector.broadcast %4 : vector<1x256xf32> to vector<4x256xf32>
    %6 = arith.addf %3, %5 : vector<4x256xf32>
    %c0_6 = arith.constant 0 : index
    %c0_7 = arith.constant 0 : index
    %c0_8 = arith.constant 0 : index
    %7 = vector.load %arg9[%c0_6, %c0_7, %c0_8] : memref<8x4x256xf32, #tpu.memory_space<vmem>>, vector<1x4x256xf32>
    %8 = vector.shape_cast %7 : vector<1x4x256xf32> to vector<4x256xf32>
    %9 = vector.shape_cast %6 : vector<4x256xf32> to vector<1x4x256xf32>
    tpu.vector_store %arg9[%c0_6, %c0_7, %c0_8], %9 {strides = array<i32>} : memref<8x4x256xf32, #tpu.memory_space<vmem>>, vector<1x4x256xf32>,
    %c1 = arith.constant 1 : index
    %c0_9 = arith.constant 0 : index
    %c0_10 = arith.constant 0 : index
    %10 = vector.load %arg0[%c1, %c0_9, %c0_10] : memref<8x4x9xf32, #tpu.memory_space<vmem>>, vector<1x4x9xf32>
    %11 = vector.shape_cast %10 : vector<1x4x9xf32> to vector<4x9xf32>
    %c0_11 = arith.constant 0 : index
    %c0_12 = arith.constant 0 : index
    %12 = vector.load %arg1[%c0_11, %c0_12] : memref<9x256xf32, #tpu.memory_space<vmem>>, vector<9x256xf32>
    %cst_13 = arith.constant dense<0.000000e+00> : vector<4x256xf32>
    %13 = tpu.matmul %11, %12, %cst_13 {dimension_numbers = #tpu.dot_dimension_numbers<[1], [0], [0], [1], [0, 0, 1, 1], [], []>} : vector<4x9xf32>, vector<9x256xf32>, vector<4x256xf32> -> vector<4x256xf32>
    %c0_14 = arith.constant 0 : index
    %c0_15 = arith.constant 0 : index
    %14 = vector.load %arg3[%c0_14, %c0_15] : memref<1x256xf32, #tpu.memory_space<vmem>>, vector<1x256xf32>
    %15 = vector.broadcast %14 : vector<1x256xf32> to vector<4x256xf32>
    %16 = arith.addf %13, %15 : vector<4x256xf32>
    %c1_16 = arith.constant 1 : index
    %c0_17 = arith.constant 0 : index
    %c0_18 = arith.constant 0 : index
    %17 = vector.load %arg9[%c1_16, %c0_17, %c0_18] : memref<8x4x256xf32, #tpu.memory_space<vmem>>, vector<1x4x256xf32>
    %18 = vector.shape_cast %17 : vector<1x4x256xf32> to vector<4x256xf32>
    %19 = vector.shape_cast %16 : vector<4x256xf32> to vector<1x4x256xf32>
    tpu.vector_store %arg9[%c1_16, %c0_17, %c0_18], %19 {strides = array<i32>} : memref<8x4x256xf32, #tpu.memory_space<vmem>>, vector<1x4x256xf32>,
    %c2 = arith.constant 2 : index
    %c0_19 = arith.constant 0 : index
    %c0_20 = arith.constant 0 : index
    %20 = vector.load %arg0[%c2, %c0_19, %c0_20] : memref<8x4x9xf32, #tpu.memory_space<vmem>>, vector<1x4x9xf32>
    %21 = vector.shape_cast %20 : vector<1x4x9xf32> to vector<4x9xf32>
    %c0_21 = arith.constant 0 : index
    %c0_22 = arith.constant 0 : index
    %22 = vector.load %arg1[%c0_21, %c0_22] : memref<9x256xf32, #tpu.memory_space<vmem>>, vector<9x256xf32>
    %cst_23 = arith.constant dense<0.000000e+00> : vector<4x256xf32>
    %23 = tpu.matmul %21, %22, %cst_23 {dimension_numbers = #tpu.dot_dimension_numbers<[1], [0], [0], [1], [0, 0, 1, 1], [], []>} : vector<4x9xf32>, vector<9x256xf32>, vector<4x256xf32> -> vector<4x256xf32>
    %c0_24 = arith.constant 0 : index
    %c0_25 = arith.constant 0 : index
    %24 = vector.load %arg3[%c0_24, %c0_25] : memref<1x256xf32, #tpu.memory_space<vmem>>, vector<1x256xf32>
    %25 = vector.broadcast %24 : vector<1x256xf32> to vector<4x256xf32>
    %26 = arith.addf %23, %25 : vector<4x256xf32>
    %c2_26 = arith.constant 2 : index
    %c0_27 = arith.constant 0 : index
    %c0_28 = arith.constant 0 : index
    %27 = vector.load %arg9[%c2_26, %c0_27, %c0_28] : memref<8x4x256xf32, #tpu.memory_space<vmem>>, vector<1x4x256xf32>
    %28 = vector.shape_cast %27 : vector<1x4x256xf32> to vector<4x256xf32>
    %29 = vector.shape_cast %26 : vector<4x256xf32> to vector<1x4x256xf32>
    tpu.vector_store %arg9[%c2_26, %c0_27, %c0_28], %29 {strides = array<i32>} : memref<8x4x256xf32, #tpu.memory_space<vmem>>, vector<1x4x256xf32>,
    %c3 = arith.constant 3 : index
    %c0_29 = arith.constant 0 : index
    %c0_30 = arith.constant 0 : index
    %30 = vector.load %arg0[%c3, %c0_29, %c0_30] : memref<8x4x9xf32, #tpu.memory_space<vmem>>, vector<1x4x9xf32>
    %31 = vector.shape_cast %30 : vector<1x4x9xf32> to vector<4x9xf32>
    %c0_31 = arith.constant 0 : index
    %c0_32 = arith.constant 0 : index
    %32 = vector.load %arg1[%c0_31, %c0_32] : memref<9x256xf32, #tpu.memory_space<vmem>>, vector<9x256xf32>
    %cst_33 = arith.constant dense<0.000000e+00> : vector<4x256xf32>
    %33 = tpu.matmul %31, %32, %cst_33 {dimension_numbers = #tpu.dot_dimension_numbers<[1], [0], [0], [1], [0, 0, 1, 1], [], []>} : vector<4x9xf32>, vector<9x256xf32>, vector<4x256xf32> -> vector<4x256xf32>
    %c0_34 = arith.constant 0 : index
    %c0_35 = arith.constant 0 : index
    %34 = vector.load %arg3[%c0_34, %c0_35] : memref<1x256xf32, #tpu.memory_space<vmem>>, vector<1x256xf32>
    %35 = vector.broadcast %34 : vector<1x256xf32> to vector<4x256xf32>
    %36 = arith.addf %33, %35 : vector<4x256xf32>
    %c3_36 = arith.constant 3 : index
    %c0_37 = arith.constant 0 : index
    %c0_38 = arith.constant 0 : index
    %37 = vector.load %arg9[%c3_36, %c0_37, %c0_38] : memref<8x4x256xf32, #tpu.memory_space<vmem>>, vector<1x4x256xf32>
    %38 = vector.shape_cast %37 : vector<1x4x256xf32> to vector<4x256xf32>
    %39 = vector.shape_cast %36 : vector<4x256xf32> to vector<1x4x256xf32>
    tpu.vector_store %arg9[%c3_36, %c0_37, %c0_38], %39 {strides = array<i32>} : memref<8x4x256xf32, #tpu.memory_space<vmem>>, vector<1x4x256xf32>,
    %c4 = arith.constant 4 : index
    %c0_39 = arith.constant 0 : index
    %c0_40 = arith.constant 0 : index
    %40 = vector.load %arg0[%c4, %c0_39, %c0_40] : memref<8x4x9xf32, #tpu.memory_space<vmem>>, vector<1x4x9xf32>
    %41 = vector.shape_cast %40 : vector<1x4x9xf32> to vector<4x9xf32>
    %c0_41 = arith.constant 0 : index
    %c0_42 = arith.constant 0 : index
    %42 = vector.load %arg1[%c0_41, %c0_42] : memref<9x256xf32, #tpu.memory_space<vmem>>, vector<9x256xf32>
    %cst_43 = arith.constant dense<0.000000e+00> : vector<4x256xf32>
    %43 = tpu.matmul %41, %42, %cst_43 {dimension_numbers = #tpu.dot_dimension_numbers<[1], [0], [0], [1], [0, 0, 1, 1], [], []>} : vector<4x9xf32>, vector<9x256xf32>, vector<4x256xf32> -> vector<4x256xf32>
    %c0_44 = arith.constant 0 : index
    %c0_45 = arith.constant 0 : index
    %44 = vector.load %arg3[%c0_44, %c0_45] : memref<1x256xf32, #tpu.memory_space<vmem>>, vector<1x256xf32>
    %45 = vector.broadcast %44 : vector<1x256xf32> to vector<4x256xf32>
    %46 = arith.addf %43, %45 : vector<4x256xf32>
    %c4_46 = arith.constant 4 : index
    %c0_47 = arith.constant 0 : index
    %c0_48 = arith.constant 0 : index
    %47 = vector.load %arg9[%c4_46, %c0_47, %c0_48] : memref<8x4x256xf32, #tpu.memory_space<vmem>>, vector<1x4x256xf32>
    %48 = vector.shape_cast %47 : vector<1x4x256xf32> to vector<4x256xf32>
    %49 = vector.shape_cast %46 : vector<4x256xf32> to vector<1x4x256xf32>
    tpu.vector_store %arg9[%c4_46, %c0_47, %c0_48], %49 {strides = array<i32>} : memref<8x4x256xf32, #tpu.memory_space<vmem>>, vector<1x4x256xf32>,
    %c5 = arith.constant 5 : index
    %c0_49 = arith.constant 0 : index
    %c0_50 = arith.constant 0 : index
    %50 = vector.load %arg0[%c5, %c0_49, %c0_50] : memref<8x4x9xf32, #tpu.memory_space<vmem>>, vector<1x4x9xf32>
    %51 = vector.shape_cast %50 : vector<1x4x9xf32> to vector<4x9xf32>
    %c0_51 = arith.constant 0 : index
    %c0_52 = arith.constant 0 : index
    %52 = vector.load %arg1[%c0_51, %c0_52] : memref<9x256xf32, #tpu.memory_space<vmem>>, vector<9x256xf32>
    %cst_53 = arith.constant dense<0.000000e+00> : vector<4x256xf32>
    %53 = tpu.matmul %51, %52, %cst_53 {dimension_numbers = #tpu.dot_dimension_numbers<[1], [0], [0], [1], [0, 0, 1, 1], [], []>} : vector<4x9xf32>, vector<9x256xf32>, vector<4x256xf32> -> vector<4x256xf32>
    %c0_54 = arith.constant 0 : index
    %c0_55 = arith.constant 0 : index
    %54 = vector.load %arg3[%c0_54, %c0_55] : memref<1x256xf32, #tpu.memory_space<vmem>>, vector<1x256xf32>
    %55 = vector.broadcast %54 : vector<1x256xf32> to vector<4x256xf32>
    %56 = arith.addf %53, %55 : vector<4x256xf32>
    %c5_56 = arith.constant 5 : index
    %c0_57 = arith.constant 0 : index
    %c0_58 = arith.constant 0 : index
    %57 = vector.load %arg9[%c5_56, %c0_57, %c0_58] : memref<8x4x256xf32, #tpu.memory_space<vmem>>, vector<1x4x256xf32>
    %58 = vector.shape_cast %57 : vector<1x4x256xf32> to vector<4x256xf32>
    %59 = vector.shape_cast %56 : vector<4x256xf32> to vector<1x4x256xf32>
    tpu.vector_store %arg9[%c5_56, %c0_57, %c0_58], %59 {strides = array<i32>} : memref<8x4x256xf32, #tpu.memory_space<vmem>>, vector<1x4x256xf32>,
    %c6 = arith.constant 6 : index
    %c0_59 = arith.constant 0 : index
    %c0_60 = arith.constant 0 : index
    %60 = vector.load %arg0[%c6, %c0_59, %c0_60] : memref<8x4x9xf32, #tpu.memory_space<vmem>>, vector<1x4x9xf32>
    %61 = vector.shape_cast %60 : vector<1x4x9xf32> to vector<4x9xf32>
    %c0_61 = arith.constant 0 : index
    %c0_62 = arith.constant 0 : index
    %62 = vector.load %arg1[%c0_61, %c0_62] : memref<9x256xf32, #tpu.memory_space<vmem>>, vector<9x256xf32>
    %cst_63 = arith.constant dense<0.000000e+00> : vector<4x256xf32>
    %63 = tpu.matmul %61, %62, %cst_63 {dimension_numbers = #tpu.dot_dimension_numbers<[1], [0], [0], [1], [0, 0, 1, 1], [], []>} : vector<4x9xf32>, vector<9x256xf32>, vector<4x256xf32> -> vector<4x256xf32>
    %c0_64 = arith.constant 0 : index
    %c0_65 = arith.constant 0 : index
    %64 = vector.load %arg3[%c0_64, %c0_65] : memref<1x256xf32, #tpu.memory_space<vmem>>, vector<1x256xf32>
    %65 = vector.broadcast %64 : vector<1x256xf32> to vector<4x256xf32>
    %66 = arith.addf %63, %65 : vector<4x256xf32>
    %c6_66 = arith.constant 6 : index
    %c0_67 = arith.constant 0 : index
    %c0_68 = arith.constant 0 : index
    %67 = vector.load %arg9[%c6_66, %c0_67, %c0_68] : memref<8x4x256xf32, #tpu.memory_space<vmem>>, vector<1x4x256xf32>
    %68 = vector.shape_cast %67 : vector<1x4x256xf32> to vector<4x256xf32>
    %69 = vector.shape_cast %66 : vector<4x256xf32> to vector<1x4x256xf32>
    tpu.vector_store %arg9[%c6_66, %c0_67, %c0_68], %69 {strides = array<i32>} : memref<8x4x256xf32, #tpu.memory_space<vmem>>, vector<1x4x256xf32>,
    %c7 = arith.constant 7 : index
    %c0_69 = arith.constant 0 : index
    %c0_70 = arith.constant 0 : index
    %70 = vector.load %arg0[%c7, %c0_69, %c0_70] : memref<8x4x9xf32, #tpu.memory_space<vmem>>, vector<1x4x9xf32>
    %71 = vector.shape_cast %70 : vector<1x4x9xf32> to vector<4x9xf32>
    %c0_71 = arith.constant 0 : index
    %c0_72 = arith.constant 0 : index
    %72 = vector.load %arg1[%c0_71, %c0_72] : memref<9x256xf32, #tpu.memory_space<vmem>>, vector<9x256xf32>
    %cst_73 = arith.constant dense<0.000000e+00> : vector<4x256xf32>
    %73 = tpu.matmul %71, %72, %cst_73 {dimension_numbers = #tpu.dot_dimension_numbers<[1], [0], [0], [1], [0, 0, 1, 1], [], []>} : vector<4x9xf32>, vector<9x256xf32>, vector<4x256xf32> -> vector<4x256xf32>
    %c0_74 = arith.constant 0 : index
    %c0_75 = arith.constant 0 : index
    %74 = vector.load %arg3[%c0_74, %c0_75] : memref<1x256xf32, #tpu.memory_space<vmem>>, vector<1x256xf32>
    %75 = vector.broadcast %74 : vector<1x256xf32> to vector<4x256xf32>
    %76 = arith.addf %73, %75 : vector<4x256xf32>
    %c7_76 = arith.constant 7 : index
    %c0_77 = arith.constant 0 : index
    %c0_78 = arith.constant 0 : index
    %77 = vector.load %arg9[%c7_76, %c0_77, %c0_78] : memref<8x4x256xf32, #tpu.memory_space<vmem>>, vector<1x4x256xf32>
    %78 = vector.shape_cast %77 : vector<1x4x256xf32> to vector<4x256xf32>
    %79 = vector.shape_cast %76 : vector<4x256xf32> to vector<1x4x256xf32>
    tpu.vector_store %arg9[%c7_76, %c0_77, %c0_78], %79 {strides = array<i32>} : memref<8x4x256xf32, #tpu.memory_space<vmem>>, vector<1x4x256xf32>,
    %cst_79 = arith.constant 0.000000e+00 : f32
    %80 = vector.broadcast %cst_79 : f32 to vector<4x64xf32>
    %cst_80 = arith.constant 0.000000e+00 : f32
    %81 = vector.broadcast %cst_80 : f32 to vector<4x64xf32>
    %c0_81 = arith.constant 0 : index
    %c0_82 = arith.constant 0 : index
    %c0_83 = arith.constant 0 : index
    %82 = vector.load %arg9[%c0_81, %c0_82, %c0_83] : memref<8x4x256xf32, #tpu.memory_space<vmem>>, vector<1x4x256xf32>
    %83 = vector.shape_cast %82 : vector<1x4x256xf32> to vector<4x256xf32>
    %c0_84 = arith.constant 0 : index
    %c0_85 = arith.constant 0 : index
    %84 = vector.load %arg2[%c0_84, %c0_85] : memref<64x256xf32, #tpu.memory_space<vmem>>, vector<64x256xf32>
    %cst_86 = arith.constant dense<0.000000e+00> : vector<4x256xf32>
    %85 = tpu.matmul %80, %84, %cst_86 {dimension_numbers = #tpu.dot_dimension_numbers<[1], [0], [0], [1], [0, 0, 1, 1], [], []>} : vector<4x64xf32>, vector<64x256xf32>, vector<4x256xf32> -> vector<4x256xf32>
    %86 = arith.addf %83, %85 : vector<4x256xf32>
    %87 = vector.extract_strided_slice %86 {offsets = [0, 0], sizes = [4, 192], strides = [1, 1]} : vector<4x256xf32> to vector<4x192xf32>
    %88 = arith.negf %87 : vector<4x192xf32>
    %89 = math.exp %88 : vector<4x192xf32>
    %cst_87 = arith.constant 1.000000e+00 : f32
    %90 = vector.broadcast %cst_87 : f32 to vector<4x192xf32>
    %91 = arith.addf %90, %89 : vector<4x192xf32>
    %92 = arith.divf %90, %91 : vector<4x192xf32>
    %93 = vector.extract_strided_slice %92 {offsets = [0, 0], sizes = [4, 64], strides = [1, 1]} : vector<4x192xf32> to vector<4x64xf32>
    %94 = vector.extract_strided_slice %92 {offsets = [0, 64], sizes = [4, 64], strides = [1, 1]} : vector<4x192xf32> to vector<4x64xf32>
    %95 = vector.extract_strided_slice %92 {offsets = [0, 128], sizes = [4, 64], strides = [1, 1]} : vector<4x192xf32> to vector<4x64xf32>
    %96 = vector.extract_strided_slice %86 {offsets = [0, 192], sizes = [4, 64], strides = [1, 1]} : vector<4x256xf32> to vector<4x64xf32>
    %97 = math.tanh %96 : vector<4x64xf32>
    %98 = arith.mulf %94, %81 : vector<4x64xf32>
    %99 = arith.mulf %93, %97 : vector<4x64xf32>
    %100 = arith.addf %98, %99 : vector<4x64xf32>
    %101 = math.tanh %100 : vector<4x64xf32>
    %102 = arith.mulf %95, %101 : vector<4x64xf32>
    %c0_88 = arith.constant 0 : index
    %c0_89 = arith.constant 0 : index
    %103 = vector.load %arg4[%c0_88, %c0_89] : memref<64x64xf32, #tpu.memory_space<vmem>>, vector<64x64xf32>
    %cst_90 = arith.constant dense<0.000000e+00> : vector<4x64xf32>
    %104 = tpu.matmul %102, %103, %cst_90 {dimension_numbers = #tpu.dot_dimension_numbers<[1], [0], [0], [1], [0, 0, 1, 1], [], []>} : vector<4x64xf32>, vector<64x64xf32>, vector<4x64xf32> -> vector<4x64xf32>
    %c0_91 = arith.constant 0 : index
    %c0_92 = arith.constant 0 : index
    %105 = vector.load %arg5[%c0_91, %c0_92] : memref<1x64xf32, #tpu.memory_space<vmem>>, vector<1x64xf32>
    %106 = vector.broadcast %105 : vector<1x64xf32> to vector<4x64xf32>
    %107 = arith.addf %104, %106 : vector<4x64xf32>
    %cst_93 = arith.constant 0.000000e+00 : f32
    %108 = vector.broadcast %cst_93 : f32 to vector<4x64xf32>
    %109 = arith.maximumf %107, %108 : vector<4x64xf32>
    %c0_94 = arith.constant 0 : index
    %c0_95 = arith.constant 0 : index
    %c0_96 = arith.constant 0 : index
    %110 = vector.load %arg10[%c0_94, %c0_95, %c0_96] : memref<8x4x64xf32, #tpu.memory_space<vmem>>, vector<1x4x64xf32>
    %111 = vector.shape_cast %110 : vector<1x4x64xf32> to vector<4x64xf32>
    %112 = vector.shape_cast %109 : vector<4x64xf32> to vector<1x4x64xf32>
    tpu.vector_store %arg10[%c0_94, %c0_95, %c0_96], %112 {strides = array<i32>} : memref<8x4x64xf32, #tpu.memory_space<vmem>>, vector<1x4x64xf32>,
    %c1_97 = arith.constant 1 : index
    %c0_98 = arith.constant 0 : index
    %c0_99 = arith.constant 0 : index
    %113 = vector.load %arg9[%c1_97, %c0_98, %c0_99] : memref<8x4x256xf32, #tpu.memory_space<vmem>>, vector<1x4x256xf32>
    %114 = vector.shape_cast %113 : vector<1x4x256xf32> to vector<4x256xf32>
    %c0_100 = arith.constant 0 : index
    %c0_101 = arith.constant 0 : index
    %115 = vector.load %arg2[%c0_100, %c0_101] : memref<64x256xf32, #tpu.memory_space<vmem>>, vector<64x256xf32>
    %cst_102 = arith.constant dense<0.000000e+00> : vector<4x256xf32>
    %116 = tpu.matmul %102, %115, %cst_102 {dimension_numbers = #tpu.dot_dimension_numbers<[1], [0], [0], [1], [0, 0, 1, 1], [], []>} : vector<4x64xf32>, vector<64x256xf32>, vector<4x256xf32> -> vector<4x256xf32>
    %117 = arith.addf %114, %116 : vector<4x256xf32>
    %118 = vector.extract_strided_slice %117 {offsets = [0, 0], sizes = [4, 192], strides = [1, 1]} : vector<4x256xf32> to vector<4x192xf32>
    %119 = arith.negf %118 : vector<4x192xf32>
    %120 = math.exp %119 : vector<4x192xf32>
    %cst_103 = arith.constant 1.000000e+00 : f32
    %121 = vector.broadcast %cst_103 : f32 to vector<4x192xf32>
    %122 = arith.addf %121, %120 : vector<4x192xf32>
    %123 = arith.divf %121, %122 : vector<4x192xf32>
    %124 = vector.extract_strided_slice %123 {offsets = [0, 0], sizes = [4, 64], strides = [1, 1]} : vector<4x192xf32> to vector<4x64xf32>
    %125 = vector.extract_strided_slice %123 {offsets = [0, 64], sizes = [4, 64], strides = [1, 1]} : vector<4x192xf32> to vector<4x64xf32>
    %126 = vector.extract_strided_slice %123 {offsets = [0, 128], sizes = [4, 64], strides = [1, 1]} : vector<4x192xf32> to vector<4x64xf32>
    %127 = vector.extract_strided_slice %117 {offsets = [0, 192], sizes = [4, 64], strides = [1, 1]} : vector<4x256xf32> to vector<4x64xf32>
    %128 = math.tanh %127 : vector<4x64xf32>
    %129 = arith.mulf %125, %100 : vector<4x64xf32>
    %130 = arith.mulf %124, %128 : vector<4x64xf32>
    %131 = arith.addf %129, %130 : vector<4x64xf32>
    %132 = math.tanh %131 : vector<4x64xf32>
    %133 = arith.mulf %126, %132 : vector<4x64xf32>
    %c0_104 = arith.constant 0 : index
    %c0_105 = arith.constant 0 : index
    %134 = vector.load %arg4[%c0_104, %c0_105] : memref<64x64xf32, #tpu.memory_space<vmem>>, vector<64x64xf32>
    %cst_106 = arith.constant dense<0.000000e+00> : vector<4x64xf32>
    %135 = tpu.matmul %133, %134, %cst_106 {dimension_numbers = #tpu.dot_dimension_numbers<[1], [0], [0], [1], [0, 0, 1, 1], [], []>} : vector<4x64xf32>, vector<64x64xf32>, vector<4x64xf32> -> vector<4x64xf32>
    %c0_107 = arith.constant 0 : index
    %c0_108 = arith.constant 0 : index
    %136 = vector.load %arg5[%c0_107, %c0_108] : memref<1x64xf32, #tpu.memory_space<vmem>>, vector<1x64xf32>
    %137 = vector.broadcast %136 : vector<1x64xf32> to vector<4x64xf32>
    %138 = arith.addf %135, %137 : vector<4x64xf32>
    %cst_109 = arith.constant 0.000000e+00 : f32
    %139 = vector.broadcast %cst_109 : f32 to vector<4x64xf32>
    %140 = arith.maximumf %138, %139 : vector<4x64xf32>
    %c1_110 = arith.constant 1 : index
    %c0_111 = arith.constant 0 : index
    %c0_112 = arith.constant 0 : index
    %141 = vector.load %arg10[%c1_110, %c0_111, %c0_112] : memref<8x4x64xf32, #tpu.memory_space<vmem>>, vector<1x4x64xf32>
    %142 = vector.shape_cast %141 : vector<1x4x64xf32> to vector<4x64xf32>
    %143 = vector.shape_cast %140 : vector<4x64xf32> to vector<1x4x64xf32>
    tpu.vector_store %arg10[%c1_110, %c0_111, %c0_112], %143 {strides = array<i32>} : memref<8x4x64xf32, #tpu.memory_space<vmem>>, vector<1x4x64xf32>,
    %c2_113 = arith.constant 2 : index
    %c0_114 = arith.constant 0 : index
    %c0_115 = arith.constant 0 : index
    %144 = vector.load %arg9[%c2_113, %c0_114, %c0_115] : memref<8x4x256xf32, #tpu.memory_space<vmem>>, vector<1x4x256xf32>
    %145 = vector.shape_cast %144 : vector<1x4x256xf32> to vector<4x256xf32>
    %c0_116 = arith.constant 0 : index
    %c0_117 = arith.constant 0 : index
    %146 = vector.load %arg2[%c0_116, %c0_117] : memref<64x256xf32, #tpu.memory_space<vmem>>, vector<64x256xf32>
    %cst_118 = arith.constant dense<0.000000e+00> : vector<4x256xf32>
    %147 = tpu.matmul %133, %146, %cst_118 {dimension_numbers = #tpu.dot_dimension_numbers<[1], [0], [0], [1], [0, 0, 1, 1], [], []>} : vector<4x64xf32>, vector<64x256xf32>, vector<4x256xf32> -> vector<4x256xf32>
    %148 = arith.addf %145, %147 : vector<4x256xf32>
    %149 = vector.extract_strided_slice %148 {offsets = [0, 0], sizes = [4, 192], strides = [1, 1]} : vector<4x256xf32> to vector<4x192xf32>
    %150 = arith.negf %149 : vector<4x192xf32>
    %151 = math.exp %150 : vector<4x192xf32>
    %cst_119 = arith.constant 1.000000e+00 : f32
    %152 = vector.broadcast %cst_119 : f32 to vector<4x192xf32>
    %153 = arith.addf %152, %151 : vector<4x192xf32>
    %154 = arith.divf %152, %153 : vector<4x192xf32>
    %155 = vector.extract_strided_slice %154 {offsets = [0, 0], sizes = [4, 64], strides = [1, 1]} : vector<4x192xf32> to vector<4x64xf32>
    %156 = vector.extract_strided_slice %154 {offsets = [0, 64], sizes = [4, 64], strides = [1, 1]} : vector<4x192xf32> to vector<4x64xf32>
    %157 = vector.extract_strided_slice %154 {offsets = [0, 128], sizes = [4, 64], strides = [1, 1]} : vector<4x192xf32> to vector<4x64xf32>
    %158 = vector.extract_strided_slice %148 {offsets = [0, 192], sizes = [4, 64], strides = [1, 1]} : vector<4x256xf32> to vector<4x64xf32>
    %159 = math.tanh %158 : vector<4x64xf32>
    %160 = arith.mulf %156, %131 : vector<4x64xf32>
    %161 = arith.mulf %155, %159 : vector<4x64xf32>
    %162 = arith.addf %160, %161 : vector<4x64xf32>
    %163 = math.tanh %162 : vector<4x64xf32>
    %164 = arith.mulf %157, %163 : vector<4x64xf32>
    %c0_120 = arith.constant 0 : index
    %c0_121 = arith.constant 0 : index
    %165 = vector.load %arg4[%c0_120, %c0_121] : memref<64x64xf32, #tpu.memory_space<vmem>>, vector<64x64xf32>
    %cst_122 = arith.constant dense<0.000000e+00> : vector<4x64xf32>
    %166 = tpu.matmul %164, %165, %cst_122 {dimension_numbers = #tpu.dot_dimension_numbers<[1], [0], [0], [1], [0, 0, 1, 1], [], []>} : vector<4x64xf32>, vector<64x64xf32>, vector<4x64xf32> -> vector<4x64xf32>
    %c0_123 = arith.constant 0 : index
    %c0_124 = arith.constant 0 : index
    %167 = vector.load %arg5[%c0_123, %c0_124] : memref<1x64xf32, #tpu.memory_space<vmem>>, vector<1x64xf32>
    %168 = vector.broadcast %167 : vector<1x64xf32> to vector<4x64xf32>
    %169 = arith.addf %166, %168 : vector<4x64xf32>
    %cst_125 = arith.constant 0.000000e+00 : f32
    %170 = vector.broadcast %cst_125 : f32 to vector<4x64xf32>
    %171 = arith.maximumf %169, %170 : vector<4x64xf32>
    %c2_126 = arith.constant 2 : index
    %c0_127 = arith.constant 0 : index
    %c0_128 = arith.constant 0 : index
    %172 = vector.load %arg10[%c2_126, %c0_127, %c0_128] : memref<8x4x64xf32, #tpu.memory_space<vmem>>, vector<1x4x64xf32>
    %173 = vector.shape_cast %172 : vector<1x4x64xf32> to vector<4x64xf32>
    %174 = vector.shape_cast %171 : vector<4x64xf32> to vector<1x4x64xf32>
    tpu.vector_store %arg10[%c2_126, %c0_127, %c0_128], %174 {strides = array<i32>} : memref<8x4x64xf32, #tpu.memory_space<vmem>>, vector<1x4x64xf32>,
    %c3_129 = arith.constant 3 : index
    %c0_130 = arith.constant 0 : index
    %c0_131 = arith.constant 0 : index
    %175 = vector.load %arg9[%c3_129, %c0_130, %c0_131] : memref<8x4x256xf32, #tpu.memory_space<vmem>>, vector<1x4x256xf32>
    %176 = vector.shape_cast %175 : vector<1x4x256xf32> to vector<4x256xf32>
    %c0_132 = arith.constant 0 : index
    %c0_133 = arith.constant 0 : index
    %177 = vector.load %arg2[%c0_132, %c0_133] : memref<64x256xf32, #tpu.memory_space<vmem>>, vector<64x256xf32>
    %cst_134 = arith.constant dense<0.000000e+00> : vector<4x256xf32>
    %178 = tpu.matmul %164, %177, %cst_134 {dimension_numbers = #tpu.dot_dimension_numbers<[1], [0], [0], [1], [0, 0, 1, 1], [], []>} : vector<4x64xf32>, vector<64x256xf32>, vector<4x256xf32> -> vector<4x256xf32>
    %179 = arith.addf %176, %178 : vector<4x256xf32>
    %180 = vector.extract_strided_slice %179 {offsets = [0, 0], sizes = [4, 192], strides = [1, 1]} : vector<4x256xf32> to vector<4x192xf32>
    %181 = arith.negf %180 : vector<4x192xf32>
    %182 = math.exp %181 : vector<4x192xf32>
    %cst_135 = arith.constant 1.000000e+00 : f32
    %183 = vector.broadcast %cst_135 : f32 to vector<4x192xf32>
    %184 = arith.addf %183, %182 : vector<4x192xf32>
    %185 = arith.divf %183, %184 : vector<4x192xf32>
    %186 = vector.extract_strided_slice %185 {offsets = [0, 0], sizes = [4, 64], strides = [1, 1]} : vector<4x192xf32> to vector<4x64xf32>
    %187 = vector.extract_strided_slice %185 {offsets = [0, 64], sizes = [4, 64], strides = [1, 1]} : vector<4x192xf32> to vector<4x64xf32>
    %188 = vector.extract_strided_slice %185 {offsets = [0, 128], sizes = [4, 64], strides = [1, 1]} : vector<4x192xf32> to vector<4x64xf32>
    %189 = vector.extract_strided_slice %179 {offsets = [0, 192], sizes = [4, 64], strides = [1, 1]} : vector<4x256xf32> to vector<4x64xf32>
    %190 = math.tanh %189 : vector<4x64xf32>
    %191 = arith.mulf %187, %162 : vector<4x64xf32>
    %192 = arith.mulf %186, %190 : vector<4x64xf32>
    %193 = arith.addf %191, %192 : vector<4x64xf32>
    %194 = math.tanh %193 : vector<4x64xf32>
    %195 = arith.mulf %188, %194 : vector<4x64xf32>
    %c0_136 = arith.constant 0 : index
    %c0_137 = arith.constant 0 : index
    %196 = vector.load %arg4[%c0_136, %c0_137] : memref<64x64xf32, #tpu.memory_space<vmem>>, vector<64x64xf32>
    %cst_138 = arith.constant dense<0.000000e+00> : vector<4x64xf32>
    %197 = tpu.matmul %195, %196, %cst_138 {dimension_numbers = #tpu.dot_dimension_numbers<[1], [0], [0], [1], [0, 0, 1, 1], [], []>} : vector<4x64xf32>, vector<64x64xf32>, vector<4x64xf32> -> vector<4x64xf32>
    %c0_139 = arith.constant 0 : index
    %c0_140 = arith.constant 0 : index
    %198 = vector.load %arg5[%c0_139, %c0_140] : memref<1x64xf32, #tpu.memory_space<vmem>>, vector<1x64xf32>
    %199 = vector.broadcast %198 : vector<1x64xf32> to vector<4x64xf32>
    %200 = arith.addf %197, %199 : vector<4x64xf32>
    %cst_141 = arith.constant 0.000000e+00 : f32
    %201 = vector.broadcast %cst_141 : f32 to vector<4x64xf32>
    %202 = arith.maximumf %200, %201 : vector<4x64xf32>
    %c3_142 = arith.constant 3 : index
    %c0_143 = arith.constant 0 : index
    %c0_144 = arith.constant 0 : index
    %203 = vector.load %arg10[%c3_142, %c0_143, %c0_144] : memref<8x4x64xf32, #tpu.memory_space<vmem>>, vector<1x4x64xf32>
    %204 = vector.shape_cast %203 : vector<1x4x64xf32> to vector<4x64xf32>
    %205 = vector.shape_cast %202 : vector<4x64xf32> to vector<1x4x64xf32>
    tpu.vector_store %arg10[%c3_142, %c0_143, %c0_144], %205 {strides = array<i32>} : memref<8x4x64xf32, #tpu.memory_space<vmem>>, vector<1x4x64xf32>,
    %c4_145 = arith.constant 4 : index
    %c0_146 = arith.constant 0 : index
    %c0_147 = arith.constant 0 : index
    %206 = vector.load %arg9[%c4_145, %c0_146, %c0_147] : memref<8x4x256xf32, #tpu.memory_space<vmem>>, vector<1x4x256xf32>
    %207 = vector.shape_cast %206 : vector<1x4x256xf32> to vector<4x256xf32>
    %c0_148 = arith.constant 0 : index
    %c0_149 = arith.constant 0 : index
    %208 = vector.load %arg2[%c0_148, %c0_149] : memref<64x256xf32, #tpu.memory_space<vmem>>, vector<64x256xf32>
    %cst_150 = arith.constant dense<0.000000e+00> : vector<4x256xf32>
    %209 = tpu.matmul %195, %208, %cst_150 {dimension_numbers = #tpu.dot_dimension_numbers<[1], [0], [0], [1], [0, 0, 1, 1], [], []>} : vector<4x64xf32>, vector<64x256xf32>, vector<4x256xf32> -> vector<4x256xf32>
    %210 = arith.addf %207, %209 : vector<4x256xf32>
    %211 = vector.extract_strided_slice %210 {offsets = [0, 0], sizes = [4, 192], strides = [1, 1]} : vector<4x256xf32> to vector<4x192xf32>
    %212 = arith.negf %211 : vector<4x192xf32>
    %213 = math.exp %212 : vector<4x192xf32>
    %cst_151 = arith.constant 1.000000e+00 : f32
    %214 = vector.broadcast %cst_151 : f32 to vector<4x192xf32>
    %215 = arith.addf %214, %213 : vector<4x192xf32>
    %216 = arith.divf %214, %215 : vector<4x192xf32>
    %217 = vector.extract_strided_slice %216 {offsets = [0, 0], sizes = [4, 64], strides = [1, 1]} : vector<4x192xf32> to vector<4x64xf32>
    %218 = vector.extract_strided_slice %216 {offsets = [0, 64], sizes = [4, 64], strides = [1, 1]} : vector<4x192xf32> to vector<4x64xf32>
    %219 = vector.extract_strided_slice %216 {offsets = [0, 128], sizes = [4, 64], strides = [1, 1]} : vector<4x192xf32> to vector<4x64xf32>
    %220 = vector.extract_strided_slice %210 {offsets = [0, 192], sizes = [4, 64], strides = [1, 1]} : vector<4x256xf32> to vector<4x64xf32>
    %221 = math.tanh %220 : vector<4x64xf32>
    %222 = arith.mulf %218, %193 : vector<4x64xf32>
    %223 = arith.mulf %217, %221 : vector<4x64xf32>
    %224 = arith.addf %222, %223 : vector<4x64xf32>
    %225 = math.tanh %224 : vector<4x64xf32>
    %226 = arith.mulf %219, %225 : vector<4x64xf32>
    %c0_152 = arith.constant 0 : index
    %c0_153 = arith.constant 0 : index
    %227 = vector.load %arg4[%c0_152, %c0_153] : memref<64x64xf32, #tpu.memory_space<vmem>>, vector<64x64xf32>
    %cst_154 = arith.constant dense<0.000000e+00> : vector<4x64xf32>
    %228 = tpu.matmul %226, %227, %cst_154 {dimension_numbers = #tpu.dot_dimension_numbers<[1], [0], [0], [1], [0, 0, 1, 1], [], []>} : vector<4x64xf32>, vector<64x64xf32>, vector<4x64xf32> -> vector<4x64xf32>
    %c0_155 = arith.constant 0 : index
    %c0_156 = arith.constant 0 : index
    %229 = vector.load %arg5[%c0_155, %c0_156] : memref<1x64xf32, #tpu.memory_space<vmem>>, vector<1x64xf32>
    %230 = vector.broadcast %229 : vector<1x64xf32> to vector<4x64xf32>
    %231 = arith.addf %228, %230 : vector<4x64xf32>
    %cst_157 = arith.constant 0.000000e+00 : f32
    %232 = vector.broadcast %cst_157 : f32 to vector<4x64xf32>
    %233 = arith.maximumf %231, %232 : vector<4x64xf32>
    %c4_158 = arith.constant 4 : index
    %c0_159 = arith.constant 0 : index
    %c0_160 = arith.constant 0 : index
    %234 = vector.load %arg10[%c4_158, %c0_159, %c0_160] : memref<8x4x64xf32, #tpu.memory_space<vmem>>, vector<1x4x64xf32>
    %235 = vector.shape_cast %234 : vector<1x4x64xf32> to vector<4x64xf32>
    %236 = vector.shape_cast %233 : vector<4x64xf32> to vector<1x4x64xf32>
    tpu.vector_store %arg10[%c4_158, %c0_159, %c0_160], %236 {strides = array<i32>} : memref<8x4x64xf32, #tpu.memory_space<vmem>>, vector<1x4x64xf32>,
    %c5_161 = arith.constant 5 : index
    %c0_162 = arith.constant 0 : index
    %c0_163 = arith.constant 0 : index
    %237 = vector.load %arg9[%c5_161, %c0_162, %c0_163] : memref<8x4x256xf32, #tpu.memory_space<vmem>>, vector<1x4x256xf32>
    %238 = vector.shape_cast %237 : vector<1x4x256xf32> to vector<4x256xf32>
    %c0_164 = arith.constant 0 : index
    %c0_165 = arith.constant 0 : index
    %239 = vector.load %arg2[%c0_164, %c0_165] : memref<64x256xf32, #tpu.memory_space<vmem>>, vector<64x256xf32>
    %cst_166 = arith.constant dense<0.000000e+00> : vector<4x256xf32>
    %240 = tpu.matmul %226, %239, %cst_166 {dimension_numbers = #tpu.dot_dimension_numbers<[1], [0], [0], [1], [0, 0, 1, 1], [], []>} : vector<4x64xf32>, vector<64x256xf32>, vector<4x256xf32> -> vector<4x256xf32>
    %241 = arith.addf %238, %240 : vector<4x256xf32>
    %242 = vector.extract_strided_slice %241 {offsets = [0, 0], sizes = [4, 192], strides = [1, 1]} : vector<4x256xf32> to vector<4x192xf32>
    %243 = arith.negf %242 : vector<4x192xf32>
    %244 = math.exp %243 : vector<4x192xf32>
    %cst_167 = arith.constant 1.000000e+00 : f32
    %245 = vector.broadcast %cst_167 : f32 to vector<4x192xf32>
    %246 = arith.addf %245, %244 : vector<4x192xf32>
    %247 = arith.divf %245, %246 : vector<4x192xf32>
    %248 = vector.extract_strided_slice %247 {offsets = [0, 0], sizes = [4, 64], strides = [1, 1]} : vector<4x192xf32> to vector<4x64xf32>
    %249 = vector.extract_strided_slice %247 {offsets = [0, 64], sizes = [4, 64], strides = [1, 1]} : vector<4x192xf32> to vector<4x64xf32>
    %250 = vector.extract_strided_slice %247 {offsets = [0, 128], sizes = [4, 64], strides = [1, 1]} : vector<4x192xf32> to vector<4x64xf32>
    %251 = vector.extract_strided_slice %241 {offsets = [0, 192], sizes = [4, 64], strides = [1, 1]} : vector<4x256xf32> to vector<4x64xf32>
    %252 = math.tanh %251 : vector<4x64xf32>
    %253 = arith.mulf %249, %224 : vector<4x64xf32>
    %254 = arith.mulf %248, %252 : vector<4x64xf32>
    %255 = arith.addf %253, %254 : vector<4x64xf32>
    %256 = math.tanh %255 : vector<4x64xf32>
    %257 = arith.mulf %250, %256 : vector<4x64xf32>
    %c0_168 = arith.constant 0 : index
    %c0_169 = arith.constant 0 : index
    %258 = vector.load %arg4[%c0_168, %c0_169] : memref<64x64xf32, #tpu.memory_space<vmem>>, vector<64x64xf32>
    %cst_170 = arith.constant dense<0.000000e+00> : vector<4x64xf32>
    %259 = tpu.matmul %257, %258, %cst_170 {dimension_numbers = #tpu.dot_dimension_numbers<[1], [0], [0], [1], [0, 0, 1, 1], [], []>} : vector<4x64xf32>, vector<64x64xf32>, vector<4x64xf32> -> vector<4x64xf32>
    %c0_171 = arith.constant 0 : index
    %c0_172 = arith.constant 0 : index
    %260 = vector.load %arg5[%c0_171, %c0_172] : memref<1x64xf32, #tpu.memory_space<vmem>>, vector<1x64xf32>
    %261 = vector.broadcast %260 : vector<1x64xf32> to vector<4x64xf32>
    %262 = arith.addf %259, %261 : vector<4x64xf32>
    %cst_173 = arith.constant 0.000000e+00 : f32
    %263 = vector.broadcast %cst_173 : f32 to vector<4x64xf32>
    %264 = arith.maximumf %262, %263 : vector<4x64xf32>
    %c5_174 = arith.constant 5 : index
    %c0_175 = arith.constant 0 : index
    %c0_176 = arith.constant 0 : index
    %265 = vector.load %arg10[%c5_174, %c0_175, %c0_176] : memref<8x4x64xf32, #tpu.memory_space<vmem>>, vector<1x4x64xf32>
    %266 = vector.shape_cast %265 : vector<1x4x64xf32> to vector<4x64xf32>
    %267 = vector.shape_cast %264 : vector<4x64xf32> to vector<1x4x64xf32>
    tpu.vector_store %arg10[%c5_174, %c0_175, %c0_176], %267 {strides = array<i32>} : memref<8x4x64xf32, #tpu.memory_space<vmem>>, vector<1x4x64xf32>,
    %c6_177 = arith.constant 6 : index
    %c0_178 = arith.constant 0 : index
    %c0_179 = arith.constant 0 : index
    %268 = vector.load %arg9[%c6_177, %c0_178, %c0_179] : memref<8x4x256xf32, #tpu.memory_space<vmem>>, vector<1x4x256xf32>
    %269 = vector.shape_cast %268 : vector<1x4x256xf32> to vector<4x256xf32>
    %c0_180 = arith.constant 0 : index
    %c0_181 = arith.constant 0 : index
    %270 = vector.load %arg2[%c0_180, %c0_181] : memref<64x256xf32, #tpu.memory_space<vmem>>, vector<64x256xf32>
    %cst_182 = arith.constant dense<0.000000e+00> : vector<4x256xf32>
    %271 = tpu.matmul %257, %270, %cst_182 {dimension_numbers = #tpu.dot_dimension_numbers<[1], [0], [0], [1], [0, 0, 1, 1], [], []>} : vector<4x64xf32>, vector<64x256xf32>, vector<4x256xf32> -> vector<4x256xf32>
    %272 = arith.addf %269, %271 : vector<4x256xf32>
    %273 = vector.extract_strided_slice %272 {offsets = [0, 0], sizes = [4, 192], strides = [1, 1]} : vector<4x256xf32> to vector<4x192xf32>
    %274 = arith.negf %273 : vector<4x192xf32>
    %275 = math.exp %274 : vector<4x192xf32>
    %cst_183 = arith.constant 1.000000e+00 : f32
    %276 = vector.broadcast %cst_183 : f32 to vector<4x192xf32>
    %277 = arith.addf %276, %275 : vector<4x192xf32>
    %278 = arith.divf %276, %277 : vector<4x192xf32>
    %279 = vector.extract_strided_slice %278 {offsets = [0, 0], sizes = [4, 64], strides = [1, 1]} : vector<4x192xf32> to vector<4x64xf32>
    %280 = vector.extract_strided_slice %278 {offsets = [0, 64], sizes = [4, 64], strides = [1, 1]} : vector<4x192xf32> to vector<4x64xf32>
    %281 = vector.extract_strided_slice %278 {offsets = [0, 128], sizes = [4, 64], strides = [1, 1]} : vector<4x192xf32> to vector<4x64xf32>
    %282 = vector.extract_strided_slice %272 {offsets = [0, 192], sizes = [4, 64], strides = [1, 1]} : vector<4x256xf32> to vector<4x64xf32>
    %283 = math.tanh %282 : vector<4x64xf32>
    %284 = arith.mulf %280, %255 : vector<4x64xf32>
    %285 = arith.mulf %279, %283 : vector<4x64xf32>
    %286 = arith.addf %284, %285 : vector<4x64xf32>
    %287 = math.tanh %286 : vector<4x64xf32>
    %288 = arith.mulf %281, %287 : vector<4x64xf32>
    %c0_184 = arith.constant 0 : index
    %c0_185 = arith.constant 0 : index
    %289 = vector.load %arg4[%c0_184, %c0_185] : memref<64x64xf32, #tpu.memory_space<vmem>>, vector<64x64xf32>
    %cst_186 = arith.constant dense<0.000000e+00> : vector<4x64xf32>
    %290 = tpu.matmul %288, %289, %cst_186 {dimension_numbers = #tpu.dot_dimension_numbers<[1], [0], [0], [1], [0, 0, 1, 1], [], []>} : vector<4x64xf32>, vector<64x64xf32>, vector<4x64xf32> -> vector<4x64xf32>
    %c0_187 = arith.constant 0 : index
    %c0_188 = arith.constant 0 : index
    %291 = vector.load %arg5[%c0_187, %c0_188] : memref<1x64xf32, #tpu.memory_space<vmem>>, vector<1x64xf32>
    %292 = vector.broadcast %291 : vector<1x64xf32> to vector<4x64xf32>
    %293 = arith.addf %290, %292 : vector<4x64xf32>
    %cst_189 = arith.constant 0.000000e+00 : f32
    %294 = vector.broadcast %cst_189 : f32 to vector<4x64xf32>
    %295 = arith.maximumf %293, %294 : vector<4x64xf32>
    %c6_190 = arith.constant 6 : index
    %c0_191 = arith.constant 0 : index
    %c0_192 = arith.constant 0 : index
    %296 = vector.load %arg10[%c6_190, %c0_191, %c0_192] : memref<8x4x64xf32, #tpu.memory_space<vmem>>, vector<1x4x64xf32>
    %297 = vector.shape_cast %296 : vector<1x4x64xf32> to vector<4x64xf32>
    %298 = vector.shape_cast %295 : vector<4x64xf32> to vector<1x4x64xf32>
    tpu.vector_store %arg10[%c6_190, %c0_191, %c0_192], %298 {strides = array<i32>} : memref<8x4x64xf32, #tpu.memory_space<vmem>>, vector<1x4x64xf32>,
    %c7_193 = arith.constant 7 : index
    %c0_194 = arith.constant 0 : index
    %c0_195 = arith.constant 0 : index
    %299 = vector.load %arg9[%c7_193, %c0_194, %c0_195] : memref<8x4x256xf32, #tpu.memory_space<vmem>>, vector<1x4x256xf32>
    %300 = vector.shape_cast %299 : vector<1x4x256xf32> to vector<4x256xf32>
    %c0_196 = arith.constant 0 : index
    %c0_197 = arith.constant 0 : index
    %301 = vector.load %arg2[%c0_196, %c0_197] : memref<64x256xf32, #tpu.memory_space<vmem>>, vector<64x256xf32>
    %cst_198 = arith.constant dense<0.000000e+00> : vector<4x256xf32>
    %302 = tpu.matmul %288, %301, %cst_198 {dimension_numbers = #tpu.dot_dimension_numbers<[1], [0], [0], [1], [0, 0, 1, 1], [], []>} : vector<4x64xf32>, vector<64x256xf32>, vector<4x256xf32> -> vector<4x256xf32>
    %303 = arith.addf %300, %302 : vector<4x256xf32>
    %304 = vector.extract_strided_slice %303 {offsets = [0, 0], sizes = [4, 192], strides = [1, 1]} : vector<4x256xf32> to vector<4x192xf32>
    %305 = arith.negf %304 : vector<4x192xf32>
    %306 = math.exp %305 : vector<4x192xf32>
    %cst_199 = arith.constant 1.000000e+00 : f32
    %307 = vector.broadcast %cst_199 : f32 to vector<4x192xf32>
    %308 = arith.addf %307, %306 : vector<4x192xf32>
    %309 = arith.divf %307, %308 : vector<4x192xf32>
    %310 = vector.extract_strided_slice %309 {offsets = [0, 0], sizes = [4, 64], strides = [1, 1]} : vector<4x192xf32> to vector<4x64xf32>
    %311 = vector.extract_strided_slice %309 {offsets = [0, 64], sizes = [4, 64], strides = [1, 1]} : vector<4x192xf32> to vector<4x64xf32>
    %312 = vector.extract_strided_slice %309 {offsets = [0, 128], sizes = [4, 64], strides = [1, 1]} : vector<4x192xf32> to vector<4x64xf32>
    %313 = vector.extract_strided_slice %303 {offsets = [0, 192], sizes = [4, 64], strides = [1, 1]} : vector<4x256xf32> to vector<4x64xf32>
    %314 = math.tanh %313 : vector<4x64xf32>
    %315 = arith.mulf %311, %286 : vector<4x64xf32>
    %316 = arith.mulf %310, %314 : vector<4x64xf32>
    %317 = arith.addf %315, %316 : vector<4x64xf32>
    %318 = math.tanh %317 : vector<4x64xf32>
    %319 = arith.mulf %312, %318 : vector<4x64xf32>
    %c0_200 = arith.constant 0 : index
    %c0_201 = arith.constant 0 : index
    %320 = vector.load %arg4[%c0_200, %c0_201] : memref<64x64xf32, #tpu.memory_space<vmem>>, vector<64x64xf32>
    %cst_202 = arith.constant dense<0.000000e+00> : vector<4x64xf32>
    %321 = tpu.matmul %319, %320, %cst_202 {dimension_numbers = #tpu.dot_dimension_numbers<[1], [0], [0], [1], [0, 0, 1, 1], [], []>} : vector<4x64xf32>, vector<64x64xf32>, vector<4x64xf32> -> vector<4x64xf32>
    %c0_203 = arith.constant 0 : index
    %c0_204 = arith.constant 0 : index
    %322 = vector.load %arg5[%c0_203, %c0_204] : memref<1x64xf32, #tpu.memory_space<vmem>>, vector<1x64xf32>
    %323 = vector.broadcast %322 : vector<1x64xf32> to vector<4x64xf32>
    %324 = arith.addf %321, %323 : vector<4x64xf32>
    %cst_205 = arith.constant 0.000000e+00 : f32
    %325 = vector.broadcast %cst_205 : f32 to vector<4x64xf32>
    %326 = arith.maximumf %324, %325 : vector<4x64xf32>
    %c7_206 = arith.constant 7 : index
    %c0_207 = arith.constant 0 : index
    %c0_208 = arith.constant 0 : index
    %327 = vector.load %arg10[%c7_206, %c0_207, %c0_208] : memref<8x4x64xf32, #tpu.memory_space<vmem>>, vector<1x4x64xf32>
    %328 = vector.shape_cast %327 : vector<1x4x64xf32> to vector<4x64xf32>
    %329 = vector.shape_cast %326 : vector<4x64xf32> to vector<1x4x64xf32>
    tpu.vector_store %arg10[%c7_206, %c0_207, %c0_208], %329 {strides = array<i32>} : memref<8x4x64xf32, #tpu.memory_space<vmem>>, vector<1x4x64xf32>,
    %c0_209 = arith.constant 0 : index
    %c0_210 = arith.constant 0 : index
    %c0_211 = arith.constant 0 : index
    %330 = vector.load %arg10[%c0_209, %c0_210, %c0_211] : memref<8x4x64xf32, #tpu.memory_space<vmem>>, vector<1x4x64xf32>
    %331 = vector.shape_cast %330 : vector<1x4x64xf32> to vector<4x64xf32>
    %c0_212 = arith.constant 0 : index
    %c0_213 = arith.constant 0 : index
    %332 = vector.load %arg6[%c0_212, %c0_213] : memref<64x128xf32, #tpu.memory_space<vmem>>, vector<64x128xf32>
    %cst_214 = arith.constant dense<0.000000e+00> : vector<4x128xf32>
    %333 = tpu.matmul %331, %332, %cst_214 {dimension_numbers = #tpu.dot_dimension_numbers<[1], [0], [0], [1], [0, 0, 1, 1], [], []>} : vector<4x64xf32>, vector<64x128xf32>, vector<4x128xf32> -> vector<4x128xf32>
    %c0_215 = arith.constant 0 : index
    %c0_216 = arith.constant 0 : index
    %334 = vector.load %arg7[%c0_215, %c0_216] : memref<1x128xf32, #tpu.memory_space<vmem>>, vector<1x128xf32>
    %335 = vector.broadcast %334 : vector<1x128xf32> to vector<4x128xf32>
    %336 = arith.addf %333, %335 : vector<4x128xf32>
    %cst_217 = arith.constant dense<0xFF800000> : vector<4xf32>
    %337 = vector.multi_reduction <maximumf>, %336, %cst_217 [1] : vector<4x128xf32> to vector<4xf32>
    %338 = vector.shape_cast %337 : vector<4xf32> to vector<4x1xf32>
    %339 = vector.broadcast %338 : vector<4x1xf32> to vector<4x128xf32>
    %340 = arith.subf %336, %339 : vector<4x128xf32>
    %341 = math.exp %340 : vector<4x128xf32>
    %cst_218 = arith.constant dense<0.000000e+00> : vector<4xf32>
    %342 = vector.multi_reduction <add>, %341, %cst_218 [1] : vector<4x128xf32> to vector<4xf32>
    %343 = vector.shape_cast %342 : vector<4xf32> to vector<4x1xf32>
    %344 = vector.broadcast %343 : vector<4x1xf32> to vector<4x128xf32>
    %345 = arith.divf %341, %344 : vector<4x128xf32>
    %c0_219 = arith.constant 0 : index
    %c0_220 = arith.constant 0 : index
    %c0_221 = arith.constant 0 : index
    %346 = vector.load %arg8[%c0_219, %c0_220, %c0_221] : memref<8x4x128xf32, #tpu.memory_space<vmem>>, vector<1x4x128xf32>
    %347 = vector.shape_cast %346 : vector<1x4x128xf32> to vector<4x128xf32>
    %348 = vector.shape_cast %345 : vector<4x128xf32> to vector<1x4x128xf32>
    tpu.vector_store %arg8[%c0_219, %c0_220, %c0_221], %348 {strides = array<i32>} : memref<8x4x128xf32, #tpu.memory_space<vmem>>, vector<1x4x128xf32>,
    %c1_222 = arith.constant 1 : index
    %c0_223 = arith.constant 0 : index
    %c0_224 = arith.constant 0 : index
    %349 = vector.load %arg10[%c1_222, %c0_223, %c0_224] : memref<8x4x64xf32, #tpu.memory_space<vmem>>, vector<1x4x64xf32>
    %350 = vector.shape_cast %349 : vector<1x4x64xf32> to vector<4x64xf32>
    %c0_225 = arith.constant 0 : index
    %c0_226 = arith.constant 0 : index
    %351 = vector.load %arg6[%c0_225, %c0_226] : memref<64x128xf32, #tpu.memory_space<vmem>>, vector<64x128xf32>
    %cst_227 = arith.constant dense<0.000000e+00> : vector<4x128xf32>
    %352 = tpu.matmul %350, %351, %cst_227 {dimension_numbers = #tpu.dot_dimension_numbers<[1], [0], [0], [1], [0, 0, 1, 1], [], []>} : vector<4x64xf32>, vector<64x128xf32>, vector<4x128xf32> -> vector<4x128xf32>
    %c0_228 = arith.constant 0 : index
    %c0_229 = arith.constant 0 : index
    %353 = vector.load %arg7[%c0_228, %c0_229] : memref<1x128xf32, #tpu.memory_space<vmem>>, vector<1x128xf32>
    %354 = vector.broadcast %353 : vector<1x128xf32> to vector<4x128xf32>
    %355 = arith.addf %352, %354 : vector<4x128xf32>
    %cst_230 = arith.constant dense<0xFF800000> : vector<4xf32>
    %356 = vector.multi_reduction <maximumf>, %355, %cst_230 [1] : vector<4x128xf32> to vector<4xf32>
    %357 = vector.shape_cast %356 : vector<4xf32> to vector<4x1xf32>
    %358 = vector.broadcast %357 : vector<4x1xf32> to vector<4x128xf32>
    %359 = arith.subf %355, %358 : vector<4x128xf32>
    %360 = math.exp %359 : vector<4x128xf32>
    %cst_231 = arith.constant dense<0.000000e+00> : vector<4xf32>
    %361 = vector.multi_reduction <add>, %360, %cst_231 [1] : vector<4x128xf32> to vector<4xf32>
    %362 = vector.shape_cast %361 : vector<4xf32> to vector<4x1xf32>
    %363 = vector.broadcast %362 : vector<4x1xf32> to vector<4x128xf32>
    %364 = arith.divf %360, %363 : vector<4x128xf32>
    %c1_232 = arith.constant 1 : index
    %c0_233 = arith.constant 0 : index
    %c0_234 = arith.constant 0 : index
    %365 = vector.load %arg8[%c1_232, %c0_233, %c0_234] : memref<8x4x128xf32, #tpu.memory_space<vmem>>, vector<1x4x128xf32>
    %366 = vector.shape_cast %365 : vector<1x4x128xf32> to vector<4x128xf32>
    %367 = vector.shape_cast %364 : vector<4x128xf32> to vector<1x4x128xf32>
    tpu.vector_store %arg8[%c1_232, %c0_233, %c0_234], %367 {strides = array<i32>} : memref<8x4x128xf32, #tpu.memory_space<vmem>>, vector<1x4x128xf32>,
    %c2_235 = arith.constant 2 : index
    %c0_236 = arith.constant 0 : index
    %c0_237 = arith.constant 0 : index
    %368 = vector.load %arg10[%c2_235, %c0_236, %c0_237] : memref<8x4x64xf32, #tpu.memory_space<vmem>>, vector<1x4x64xf32>
    %369 = vector.shape_cast %368 : vector<1x4x64xf32> to vector<4x64xf32>
    %c0_238 = arith.constant 0 : index
    %c0_239 = arith.constant 0 : index
    %370 = vector.load %arg6[%c0_238, %c0_239] : memref<64x128xf32, #tpu.memory_space<vmem>>, vector<64x128xf32>
    %cst_240 = arith.constant dense<0.000000e+00> : vector<4x128xf32>
    %371 = tpu.matmul %369, %370, %cst_240 {dimension_numbers = #tpu.dot_dimension_numbers<[1], [0], [0], [1], [0, 0, 1, 1], [], []>} : vector<4x64xf32>, vector<64x128xf32>, vector<4x128xf32> -> vector<4x128xf32>
    %c0_241 = arith.constant 0 : index
    %c0_242 = arith.constant 0 : index
    %372 = vector.load %arg7[%c0_241, %c0_242] : memref<1x128xf32, #tpu.memory_space<vmem>>, vector<1x128xf32>
    %373 = vector.broadcast %372 : vector<1x128xf32> to vector<4x128xf32>
    %374 = arith.addf %371, %373 : vector<4x128xf32>
    %cst_243 = arith.constant dense<0xFF800000> : vector<4xf32>
    %375 = vector.multi_reduction <maximumf>, %374, %cst_243 [1] : vector<4x128xf32> to vector<4xf32>
    %376 = vector.shape_cast %375 : vector<4xf32> to vector<4x1xf32>
    %377 = vector.broadcast %376 : vector<4x1xf32> to vector<4x128xf32>
    %378 = arith.subf %374, %377 : vector<4x128xf32>
    %379 = math.exp %378 : vector<4x128xf32>
    %cst_244 = arith.constant dense<0.000000e+00> : vector<4xf32>
    %380 = vector.multi_reduction <add>, %379, %cst_244 [1] : vector<4x128xf32> to vector<4xf32>
    %381 = vector.shape_cast %380 : vector<4xf32> to vector<4x1xf32>
    %382 = vector.broadcast %381 : vector<4x1xf32> to vector<4x128xf32>
    %383 = arith.divf %379, %382 : vector<4x128xf32>
    %c2_245 = arith.constant 2 : index
    %c0_246 = arith.constant 0 : index
    %c0_247 = arith.constant 0 : index
    %384 = vector.load %arg8[%c2_245, %c0_246, %c0_247] : memref<8x4x128xf32, #tpu.memory_space<vmem>>, vector<1x4x128xf32>
    %385 = vector.shape_cast %384 : vector<1x4x128xf32> to vector<4x128xf32>
    %386 = vector.shape_cast %383 : vector<4x128xf32> to vector<1x4x128xf32>
    tpu.vector_store %arg8[%c2_245, %c0_246, %c0_247], %386 {strides = array<i32>} : memref<8x4x128xf32, #tpu.memory_space<vmem>>, vector<1x4x128xf32>,
    %c3_248 = arith.constant 3 : index
    %c0_249 = arith.constant 0 : index
    %c0_250 = arith.constant 0 : index
    %387 = vector.load %arg10[%c3_248, %c0_249, %c0_250] : memref<8x4x64xf32, #tpu.memory_space<vmem>>, vector<1x4x64xf32>
    %388 = vector.shape_cast %387 : vector<1x4x64xf32> to vector<4x64xf32>
    %c0_251 = arith.constant 0 : index
    %c0_252 = arith.constant 0 : index
    %389 = vector.load %arg6[%c0_251, %c0_252] : memref<64x128xf32, #tpu.memory_space<vmem>>, vector<64x128xf32>
    %cst_253 = arith.constant dense<0.000000e+00> : vector<4x128xf32>
    %390 = tpu.matmul %388, %389, %cst_253 {dimension_numbers = #tpu.dot_dimension_numbers<[1], [0], [0], [1], [0, 0, 1, 1], [], []>} : vector<4x64xf32>, vector<64x128xf32>, vector<4x128xf32> -> vector<4x128xf32>
    %c0_254 = arith.constant 0 : index
    %c0_255 = arith.constant 0 : index
    %391 = vector.load %arg7[%c0_254, %c0_255] : memref<1x128xf32, #tpu.memory_space<vmem>>, vector<1x128xf32>
    %392 = vector.broadcast %391 : vector<1x128xf32> to vector<4x128xf32>
    %393 = arith.addf %390, %392 : vector<4x128xf32>
    %cst_256 = arith.constant dense<0xFF800000> : vector<4xf32>
    %394 = vector.multi_reduction <maximumf>, %393, %cst_256 [1] : vector<4x128xf32> to vector<4xf32>
    %395 = vector.shape_cast %394 : vector<4xf32> to vector<4x1xf32>
    %396 = vector.broadcast %395 : vector<4x1xf32> to vector<4x128xf32>
    %397 = arith.subf %393, %396 : vector<4x128xf32>
    %398 = math.exp %397 : vector<4x128xf32>
    %cst_257 = arith.constant dense<0.000000e+00> : vector<4xf32>
    %399 = vector.multi_reduction <add>, %398, %cst_257 [1] : vector<4x128xf32> to vector<4xf32>
    %400 = vector.shape_cast %399 : vector<4xf32> to vector<4x1xf32>
    %401 = vector.broadcast %400 : vector<4x1xf32> to vector<4x128xf32>
    %402 = arith.divf %398, %401 : vector<4x128xf32>
    %c3_258 = arith.constant 3 : index
    %c0_259 = arith.constant 0 : index
    %c0_260 = arith.constant 0 : index
    %403 = vector.load %arg8[%c3_258, %c0_259, %c0_260] : memref<8x4x128xf32, #tpu.memory_space<vmem>>, vector<1x4x128xf32>
    %404 = vector.shape_cast %403 : vector<1x4x128xf32> to vector<4x128xf32>
    %405 = vector.shape_cast %402 : vector<4x128xf32> to vector<1x4x128xf32>
    tpu.vector_store %arg8[%c3_258, %c0_259, %c0_260], %405 {strides = array<i32>} : memref<8x4x128xf32, #tpu.memory_space<vmem>>, vector<1x4x128xf32>,
    %c4_261 = arith.constant 4 : index
    %c0_262 = arith.constant 0 : index
    %c0_263 = arith.constant 0 : index
    %406 = vector.load %arg10[%c4_261, %c0_262, %c0_263] : memref<8x4x64xf32, #tpu.memory_space<vmem>>, vector<1x4x64xf32>
    %407 = vector.shape_cast %406 : vector<1x4x64xf32> to vector<4x64xf32>
    %c0_264 = arith.constant 0 : index
    %c0_265 = arith.constant 0 : index
    %408 = vector.load %arg6[%c0_264, %c0_265] : memref<64x128xf32, #tpu.memory_space<vmem>>, vector<64x128xf32>
    %cst_266 = arith.constant dense<0.000000e+00> : vector<4x128xf32>
    %409 = tpu.matmul %407, %408, %cst_266 {dimension_numbers = #tpu.dot_dimension_numbers<[1], [0], [0], [1], [0, 0, 1, 1], [], []>} : vector<4x64xf32>, vector<64x128xf32>, vector<4x128xf32> -> vector<4x128xf32>
    %c0_267 = arith.constant 0 : index
    %c0_268 = arith.constant 0 : index
    %410 = vector.load %arg7[%c0_267, %c0_268] : memref<1x128xf32, #tpu.memory_space<vmem>>, vector<1x128xf32>
    %411 = vector.broadcast %410 : vector<1x128xf32> to vector<4x128xf32>
    %412 = arith.addf %409, %411 : vector<4x128xf32>
    %cst_269 = arith.constant dense<0xFF800000> : vector<4xf32>
    %413 = vector.multi_reduction <maximumf>, %412, %cst_269 [1] : vector<4x128xf32> to vector<4xf32>
    %414 = vector.shape_cast %413 : vector<4xf32> to vector<4x1xf32>
    %415 = vector.broadcast %414 : vector<4x1xf32> to vector<4x128xf32>
    %416 = arith.subf %412, %415 : vector<4x128xf32>
    %417 = math.exp %416 : vector<4x128xf32>
    %cst_270 = arith.constant dense<0.000000e+00> : vector<4xf32>
    %418 = vector.multi_reduction <add>, %417, %cst_270 [1] : vector<4x128xf32> to vector<4xf32>
    %419 = vector.shape_cast %418 : vector<4xf32> to vector<4x1xf32>
    %420 = vector.broadcast %419 : vector<4x1xf32> to vector<4x128xf32>
    %421 = arith.divf %417, %420 : vector<4x128xf32>
    %c4_271 = arith.constant 4 : index
    %c0_272 = arith.constant 0 : index
    %c0_273 = arith.constant 0 : index
    %422 = vector.load %arg8[%c4_271, %c0_272, %c0_273] : memref<8x4x128xf32, #tpu.memory_space<vmem>>, vector<1x4x128xf32>
    %423 = vector.shape_cast %422 : vector<1x4x128xf32> to vector<4x128xf32>
    %424 = vector.shape_cast %421 : vector<4x128xf32> to vector<1x4x128xf32>
    tpu.vector_store %arg8[%c4_271, %c0_272, %c0_273], %424 {strides = array<i32>} : memref<8x4x128xf32, #tpu.memory_space<vmem>>, vector<1x4x128xf32>,
    %c5_274 = arith.constant 5 : index
    %c0_275 = arith.constant 0 : index
    %c0_276 = arith.constant 0 : index
    %425 = vector.load %arg10[%c5_274, %c0_275, %c0_276] : memref<8x4x64xf32, #tpu.memory_space<vmem>>, vector<1x4x64xf32>
    %426 = vector.shape_cast %425 : vector<1x4x64xf32> to vector<4x64xf32>
    %c0_277 = arith.constant 0 : index
    %c0_278 = arith.constant 0 : index
    %427 = vector.load %arg6[%c0_277, %c0_278] : memref<64x128xf32, #tpu.memory_space<vmem>>, vector<64x128xf32>
    %cst_279 = arith.constant dense<0.000000e+00> : vector<4x128xf32>
    %428 = tpu.matmul %426, %427, %cst_279 {dimension_numbers = #tpu.dot_dimension_numbers<[1], [0], [0], [1], [0, 0, 1, 1], [], []>} : vector<4x64xf32>, vector<64x128xf32>, vector<4x128xf32> -> vector<4x128xf32>
    %c0_280 = arith.constant 0 : index
    %c0_281 = arith.constant 0 : index
    %429 = vector.load %arg7[%c0_280, %c0_281] : memref<1x128xf32, #tpu.memory_space<vmem>>, vector<1x128xf32>
    %430 = vector.broadcast %429 : vector<1x128xf32> to vector<4x128xf32>
    %431 = arith.addf %428, %430 : vector<4x128xf32>
    %cst_282 = arith.constant dense<0xFF800000> : vector<4xf32>
    %432 = vector.multi_reduction <maximumf>, %431, %cst_282 [1] : vector<4x128xf32> to vector<4xf32>
    %433 = vector.shape_cast %432 : vector<4xf32> to vector<4x1xf32>
    %434 = vector.broadcast %433 : vector<4x1xf32> to vector<4x128xf32>
    %435 = arith.subf %431, %434 : vector<4x128xf32>
    %436 = math.exp %435 : vector<4x128xf32>
    %cst_283 = arith.constant dense<0.000000e+00> : vector<4xf32>
    %437 = vector.multi_reduction <add>, %436, %cst_283 [1] : vector<4x128xf32> to vector<4xf32>
    %438 = vector.shape_cast %437 : vector<4xf32> to vector<4x1xf32>
    %439 = vector.broadcast %438 : vector<4x1xf32> to vector<4x128xf32>
    %440 = arith.divf %436, %439 : vector<4x128xf32>
    %c5_284 = arith.constant 5 : index
    %c0_285 = arith.constant 0 : index
    %c0_286 = arith.constant 0 : index
    %441 = vector.load %arg8[%c5_284, %c0_285, %c0_286] : memref<8x4x128xf32, #tpu.memory_space<vmem>>, vector<1x4x128xf32>
    %442 = vector.shape_cast %441 : vector<1x4x128xf32> to vector<4x128xf32>
    %443 = vector.shape_cast %440 : vector<4x128xf32> to vector<1x4x128xf32>
    tpu.vector_store %arg8[%c5_284, %c0_285, %c0_286], %443 {strides = array<i32>} : memref<8x4x128xf32, #tpu.memory_space<vmem>>, vector<1x4x128xf32>,
    %c6_287 = arith.constant 6 : index
    %c0_288 = arith.constant 0 : index
    %c0_289 = arith.constant 0 : index
    %444 = vector.load %arg10[%c6_287, %c0_288, %c0_289] : memref<8x4x64xf32, #tpu.memory_space<vmem>>, vector<1x4x64xf32>
    %445 = vector.shape_cast %444 : vector<1x4x64xf32> to vector<4x64xf32>
    %c0_290 = arith.constant 0 : index
    %c0_291 = arith.constant 0 : index
    %446 = vector.load %arg6[%c0_290, %c0_291] : memref<64x128xf32, #tpu.memory_space<vmem>>, vector<64x128xf32>
    %cst_292 = arith.constant dense<0.000000e+00> : vector<4x128xf32>
    %447 = tpu.matmul %445, %446, %cst_292 {dimension_numbers = #tpu.dot_dimension_numbers<[1], [0], [0], [1], [0, 0, 1, 1], [], []>} : vector<4x64xf32>, vector<64x128xf32>, vector<4x128xf32> -> vector<4x128xf32>
    %c0_293 = arith.constant 0 : index
    %c0_294 = arith.constant 0 : index
    %448 = vector.load %arg7[%c0_293, %c0_294] : memref<1x128xf32, #tpu.memory_space<vmem>>, vector<1x128xf32>
    %449 = vector.broadcast %448 : vector<1x128xf32> to vector<4x128xf32>
    %450 = arith.addf %447, %449 : vector<4x128xf32>
    %cst_295 = arith.constant dense<0xFF800000> : vector<4xf32>
    %451 = vector.multi_reduction <maximumf>, %450, %cst_295 [1] : vector<4x128xf32> to vector<4xf32>
    %452 = vector.shape_cast %451 : vector<4xf32> to vector<4x1xf32>
    %453 = vector.broadcast %452 : vector<4x1xf32> to vector<4x128xf32>
    %454 = arith.subf %450, %453 : vector<4x128xf32>
    %455 = math.exp %454 : vector<4x128xf32>
    %cst_296 = arith.constant dense<0.000000e+00> : vector<4xf32>
    %456 = vector.multi_reduction <add>, %455, %cst_296 [1] : vector<4x128xf32> to vector<4xf32>
    %457 = vector.shape_cast %456 : vector<4xf32> to vector<4x1xf32>
    %458 = vector.broadcast %457 : vector<4x1xf32> to vector<4x128xf32>
    %459 = arith.divf %455, %458 : vector<4x128xf32>
    %c6_297 = arith.constant 6 : index
    %c0_298 = arith.constant 0 : index
    %c0_299 = arith.constant 0 : index
    %460 = vector.load %arg8[%c6_297, %c0_298, %c0_299] : memref<8x4x128xf32, #tpu.memory_space<vmem>>, vector<1x4x128xf32>
    %461 = vector.shape_cast %460 : vector<1x4x128xf32> to vector<4x128xf32>
    %462 = vector.shape_cast %459 : vector<4x128xf32> to vector<1x4x128xf32>
    tpu.vector_store %arg8[%c6_297, %c0_298, %c0_299], %462 {strides = array<i32>} : memref<8x4x128xf32, #tpu.memory_space<vmem>>, vector<1x4x128xf32>,
    %c7_300 = arith.constant 7 : index
    %c0_301 = arith.constant 0 : index
    %c0_302 = arith.constant 0 : index
    %463 = vector.load %arg10[%c7_300, %c0_301, %c0_302] : memref<8x4x64xf32, #tpu.memory_space<vmem>>, vector<1x4x64xf32>
    %464 = vector.shape_cast %463 : vector<1x4x64xf32> to vector<4x64xf32>
    %c0_303 = arith.constant 0 : index
    %c0_304 = arith.constant 0 : index
    %465 = vector.load %arg6[%c0_303, %c0_304] : memref<64x128xf32, #tpu.memory_space<vmem>>, vector<64x128xf32>
    %cst_305 = arith.constant dense<0.000000e+00> : vector<4x128xf32>
    %466 = tpu.matmul %464, %465, %cst_305 {dimension_numbers = #tpu.dot_dimension_numbers<[1], [0], [0], [1], [0, 0, 1, 1], [], []>} : vector<4x64xf32>, vector<64x128xf32>, vector<4x128xf32> -> vector<4x128xf32>
    %c0_306 = arith.constant 0 : index
    %c0_307 = arith.constant 0 : index
    %467 = vector.load %arg7[%c0_306, %c0_307] : memref<1x128xf32, #tpu.memory_space<vmem>>, vector<1x128xf32>
    %468 = vector.broadcast %467 : vector<1x128xf32> to vector<4x128xf32>
    %469 = arith.addf %466, %468 : vector<4x128xf32>
    %cst_308 = arith.constant dense<0xFF800000> : vector<4xf32>
    %470 = vector.multi_reduction <maximumf>, %469, %cst_308 [1] : vector<4x128xf32> to vector<4xf32>
    %471 = vector.shape_cast %470 : vector<4xf32> to vector<4x1xf32>
    %472 = vector.broadcast %471 : vector<4x1xf32> to vector<4x128xf32>
    %473 = arith.subf %469, %472 : vector<4x128xf32>
    %474 = math.exp %473 : vector<4x128xf32>
    %cst_309 = arith.constant dense<0.000000e+00> : vector<4xf32>
    %475 = vector.multi_reduction <add>, %474, %cst_309 [1] : vector<4x128xf32> to vector<4xf32>
    %476 = vector.shape_cast %475 : vector<4xf32> to vector<4x1xf32>
    %477 = vector.broadcast %476 : vector<4x1xf32> to vector<4x128xf32>
    %478 = arith.divf %474, %477 : vector<4x128xf32>
    %c7_310 = arith.constant 7 : index
    %c0_311 = arith.constant 0 : index
    %c0_312 = arith.constant 0 : index
    %479 = vector.load %arg8[%c7_310, %c0_311, %c0_312] : memref<8x4x128xf32, #tpu.memory_space<vmem>>, vector<1x4x128xf32>
    %480 = vector.shape_cast %479 : vector<1x4x128xf32> to vector<4x128xf32>
    %481 = vector.shape_cast %478 : vector<4x128xf32> to vector<1x4x128xf32>
    tpu.vector_store %arg8[%c7_310, %c0_311, %c0_312], %481 {strides = array<i32>} : memref<8x4x128xf32, #tpu.memory_space<vmem>>, vector<1x4x128xf32>,
    return
  }
}

</mosaic_0001>

<bundles_post_ra>
// kernel: network_forward.1
= control target key start
LH: loop header
LB: loop body
LE: loop exit
PB: predicated region body
PF: predicated region fallthrough
CT: control target
= control target key end

     0   :  { %13 = vsyncpa [#allocation5], 0  ;;  %s5296_s0 = inlined_call_operand.hbm [shape: f32[8,4,9], index: 0, kind: input, shape index: {}]   ;;  %s5297_s1 = inlined_call_operand.hbm [shape: f32[9,256], index: 1, kind: input, shape index: {}]   ;;  %s5298_s2 = inlined_call_operand.hbm [shape: f32[64,256], index: 2, kind: input, shape index: {}]   ;;  %s5299_s3 = inlined_call_operand.vmem [shape: f32[1,256], index: 3, kind: input, shape index: {}]   ;;  %s5300_s4 = inlined_call_operand.hbm [shape: f32[64,64], index: 4, kind: input, shape index: {}]   ;;  %s5301_s5 = inlined_call_operand.vmem [shape: f32[1,64], index: 5, kind: input, shape index: {}]   ;;  %s5302_s6 = inlined_call_operand.hbm [shape: f32[64,128], index: 6, kind: input, shape index: {}]   ;;  %s5303_s7 = inlined_call_operand.vmem [shape: f32[1,128], index: 7, kind: input, shape index: {}]   ;;  %s5304_s8 = inlined_call_operand.vmem [shape: f32[8,4,128], index: 8, kind: output, shape index: {}]  }
   0x1   :  { %14 = vsyncpa [#allocation7], 0 }
   0x2   :  { %15 = vsyncpa [#allocation10], 0  ;;  %s4573_s27 = smov [#allocation6]   ;;  %s4457_s9 = scalar_lea.hbm %s5297_s1, 512 }
   0x3   :  { %s33_s28 = sshll.u32 %s4573_s27, 4  ;;  %p4458_p0 = scmp.ne.s32.totalorder %s5297_s1, %s4457_s9  ;;  %s34_s28 = int_to_ptr.vmem [resolvable:$true] %s33_s28 }
   0x4   :  { %p4461_p1 = scmp.lt.u32.totalorder %s4457_s9, %s5297_s1 }
   0x6   :  { %p4463_p2 = pnand %p4461_p1, %p4458_p0 }
   0x8   :  { %4466 = shalt.err (!%p4463_p2)
}
   0x9   :  { %s4467_s14 = scalar_lea.vmem %s34_s28, 512  ;;  %p4472_p4 = scmp.lt.s32.totalorder %s34_s28, %s34_s28 }
   0xa   :  { %p4468_p3 = scmp.ne.s32.totalorder %s34_s28, %s4467_s14  ;;  %p4473_p5 = scmp.lt.s32.totalorder %s4467_s14, %s4467_s14 }
   0xc   :  { %p4474_p6 = por %p4473_p5, %p4472_p4 }
   0xe   :  { %p4475_p7 = pnand %p4474_p6, %p4468_p3 }
  0x10   :  { %4478 = shalt.err (!%p4475_p7)
}
  0x11   :  { %s4574_s15 = smov 256   ;;  %s4575_s16 = smov 16  }
  0x12   :  { %39 = dma.hbm_to_vmem [thread:$0]  %s5297_s1, 512, %s34_s28, [#allocation7], %s4574_s15, %s4574_s15, %s4575_s16  }
  0x13   :  { %s4576_s19 = smov [#allocation9]   ;;  %s4479_s23 = scalar_lea.hbm %s5300_s4, 1024 }
  0x14   :  { %s59_s20 = sshll.u32 %s4576_s19, 4  ;;  %p4480_p8 = scmp.ne.s32.totalorder %s5300_s4, %s4479_s23  ;;  %s60_s20 = int_to_ptr.vmem [resolvable:$true] %s59_s20 }
  0x15   :  { %p4483_p9 = scmp.lt.u32.totalorder %s4479_s23, %s5300_s4 }
  0x17   :  { %p4485_p10 = pnand %p4483_p9, %p4480_p8 }
  0x19   :  { %4488 = shalt.err (!%p4485_p10)
}
  0x1a   :  { %s4489_s29 = scalar_lea.vmem %s60_s20, 1024  ;;  %p4494_p12 = scmp.lt.s32.totalorder %s60_s20, %s60_s20 }
  0x1b   :  { %p4490_p11 = scmp.ne.s32.totalorder %s60_s20, %s4489_s29  ;;  %p4495_p13 = scmp.lt.s32.totalorder %s4489_s29, %s4489_s29 }
  0x1d   :  { %p4496_p0 = por %p4495_p13, %p4494_p12 }
  0x1f   :  { %p4497_p1 = pnand %p4496_p0, %p4490_p11 }
  0x21   :  { %4500 = shalt.err (!%p4497_p1)
}
  0x22   :  { %s4577_s1 = smov 128   ;;  %s4578_s28 = smov 8  }
  0x23   :  { %65 = dma.hbm_to_vmem [thread:$0]  %s5300_s4, 1024, %s60_s20, [#allocation10], %s4577_s1, %s4577_s1, %s4578_s28  }
  0x24   :  { %s4579_s10 = smov [#allocation4]   ;;  %s4501_s14 = scalar_lea.hbm %s5296_s0, 512 }
  0x25   :  { %s21_s11 = sshll.u32 %s4579_s10, 4  ;;  %p4502_p2 = scmp.ne.s32.totalorder %s5296_s0, %s4501_s14  ;;  %s22_s11 = int_to_ptr.vmem [resolvable:$true] %s21_s11 }
  0x26   :  { %p4505_p3 = scmp.lt.u32.totalorder %s4501_s14, %s5296_s0 }
  0x28   :  { %p4507_p4 = pnand %p4505_p3, %p4502_p2 }
  0x2a   :  { %4510 = shalt.err (!%p4507_p4)
}
  0x2b   :  { %s4511_s22 = scalar_lea.vmem %s22_s11, 512  ;;  %p4516_p6 = scmp.lt.s32.totalorder %s22_s11, %s22_s11 }
  0x2c   :  { %p4512_p5 = scmp.ne.s32.totalorder %s22_s11, %s4511_s22  ;;  %p4517_p7 = scmp.lt.s32.totalorder %s4511_s22, %s4511_s22 }
  0x2e   :  { %p4518_p8 = por %p4517_p7, %p4516_p6 }
  0x30   :  { %p4519_p9 = pnand %p4518_p8, %p4512_p5 }
  0x32   :  { %4522 = shalt.err (!%p4519_p9)
}
  0x33   :  { %s4580_s4 = smov 64   ;;  %s4581_s20 = smov 4  }
  0x34   :  { %27 = dma.hbm_to_vmem [thread:$0]  %s5296_s0, 512, %s22_s11, [#allocation5], %s4580_s4, %s4580_s4, %s4581_s20  }
  0x35   :  { %s4582_s25 = smov [#allocation8]   ;;  %s4583_s27 = smov [#allocation11]  }
  0x36   :  { %s45_s26 = sshll.u32 %s4582_s25, 4  ;;  %s73_s29 = sshll.u32 %s4583_s27, 4  ;;  %s46_s26 = int_to_ptr.vmem [resolvable:$true] %s45_s26  ;;  %s74_s29 = int_to_ptr.vmem [resolvable:$true] %s73_s29 }
  0x37   :  { %s4523_s10 = scalar_lea.hbm %s5298_s2, 2048 }
  0x38   :  { %p4524_p10 = scmp.ne.s32.totalorder %s5298_s2, %s4523_s10  ;;  %p4527_p11 = scmp.lt.u32.totalorder %s4523_s10, %s5298_s2 }
  0x3a   :  { %p4529_p12 = pnand %p4527_p11, %p4524_p10 }
  0x3c   :  { %4532 = shalt.err (!%p4529_p12)
}
  0x3d   :  { %s4533_s0 = scalar_lea.vmem %s46_s26, 2048  ;;  %p4538_p0 = scmp.lt.s32.totalorder %s46_s26, %s46_s26 }
  0x3e   :  { %p4534_p13 = scmp.ne.s32.totalorder %s46_s26, %s4533_s0  ;;  %p4539_p1 = scmp.lt.s32.totalorder %s4533_s0, %s4533_s0 }
  0x40   :  { %p4540_p2 = por %p4539_p1, %p4538_p0 }
  0x42   :  { %p4541_p3 = pnand %p4540_p2, %p4534_p13 }
  0x44   :  { %4544 = shalt.err (!%p4541_p3)
}
  0x45   :  { %51 = dma.hbm_to_vmem [thread:$0]  %s5298_s2, 2048, %s46_s26, [#allocation7], %s4574_s15, %s4574_s15, %s4575_s16  }
  0x46   :  { %s4545_s22 = scalar_lea.hbm %s5302_s6, 1024 }
  0x47   :  { %p4546_p4 = scmp.ne.s32.totalorder %s5302_s6, %s4545_s22  ;;  %p4549_p5 = scmp.lt.u32.totalorder %s4545_s22, %s5302_s6 }
  0x49   :  { %p4551_p6 = pnand %p4549_p5, %p4546_p4 }
  0x4b   :  { %4554 = shalt.err (!%p4551_p6)
}
  0x4c   :  { %s4555_s27 = scalar_lea.vmem %s74_s29, 1024  ;;  %p4560_p8 = scmp.lt.s32.totalorder %s74_s29, %s74_s29 }
  0x4d   :  { %p4556_p7 = scmp.ne.s32.totalorder %s74_s29, %s4555_s27  ;;  %p4561_p9 = scmp.lt.s32.totalorder %s4555_s27, %s4555_s27 }
  0x4f   :  { %p4562_p10 = por %p4561_p9, %p4560_p8 }
  0x51   :  { %p4563_p11 = pnand %p4562_p10, %p4556_p7 }
  0x53   :  { %4566 = shalt.err (!%p4563_p11)
}
  0x54   :  { %79 = dma.hbm_to_vmem [thread:$0]  %s5302_s6, 1024, %s74_s29, [#allocation10], %s4577_s1, %s4577_s1, %s4578_s28  }
  0x55   :  { %4567 = dma.done.wait [#allocation5], 512  }
  0x56   :  { %4568 = vsyncadd [#allocation5], 4294966784 }
  0x57   :  { %4569 = dma.done.wait [#allocation7], 2560  }
  0x58   :  { %4570 = vsyncadd [#allocation7], 4294964736 }
  0x59   :  { %4571 = dma.done.wait [#allocation10], 2048  }
  0x5a   :  { %4572 = vsyncadd [#allocation10], 4294965248  ;;  %v4584_v0 = vmov 0.0   ;;  %vm118_vm0 = vcmask 1040384   ;;  %vm4585_vm1 = vmmov 1   ;;  %v4713_v2 = vld [vmem:[#allocation6 + $0x8] sm:$0xff]  ;;  %v104_v48 = vlaneseq }
  0x5b   :  { %189 = vmatprep.mubr.f32.mxu0 %v4584_v0  ;;  %292 = vmatprep.mubr.f32.mxu1 %v4584_v0  ;;  %vm4709_vm2 = vmpackc.low %vm118_vm0, %vm4585_vm1  ;;  %v101_v3 = vld [vmem:[#allocation6 + $0x18] sm:$0x1]  ;;  %v4715_v4 = vld [vmem:[#allocation6] sm:$0xff]  ;;  %vm114_vm3 = vcmask 72704   ;;  %vm4587_vm4 = vmmov 0   ;;  %vm946_vm5 = vcmask 523264  }
  0x5c   :  { %v3978_v5 = vpack.c.bf16 %v101_v3, %v4713_v2  ;;  %v100_v6 = vld [vmem:[#allocation6 + $0x10] sm:$0x1]  ;;  %v310_v7 = vld [vmem:[#allocation6 + $0x18] sm:$0x1]  ;;  %v97_v12 = vld [vmem:[#allocation4] sm:$0xf] }
  0x5d   :  { %v3981_v8 = vpack.c.bf16 %v100_v6, %v4715_v4  ;;  %v3990_v9 = vpack.c.bf16 %v310_v7, %v4713_v2  ;;  %v309_v10 = vld [vmem:[#allocation6 + $0x10] sm:$0x1]  ;;  %v518_v11 = vld [vmem:[#allocation6 + $0x18] sm:$0x1]  ;;  %v306_v17 = vld [vmem:[#allocation4 + $0x8] sm:$0xf] }
  0x5e   :  { %3980 = vmatprep.subr.msk.bf16.mxu0 %vm4709_vm2, %v3978_v5  ;;  %v3993_v13 = vpack.c.bf16 %v309_v10, %v4715_v4  ;;  %v4002_v14 = vpack.c.bf16 %v518_v11, %v4713_v2  ;;  %v517_v15 = vld [vmem:[#allocation6 + $0x10] sm:$0x1]  ;;  %v726_v16 = vld [vmem:[#allocation6 + $0x18] sm:$0x1]  ;;  %v931_v21 = vld [vmem:[#allocation8 + $0x8] sm:$0xff]  ;;  %v105_v49 = vshrl.u32 %v104_v48, 7 }
  0x5f   :  { %3983 = vmatpush1.bf16.msk.msra.mxu0 %vm4709_vm2, %v3981_v8  ;;  %v4005_v18 = vpack.c.bf16 %v517_v15, %v4715_v4  ;;  %v4014_v19 = vpack.c.bf16 %v726_v16, %v4713_v2  ;;  %v725_v20 = vld [vmem:[#allocation6 + $0x10] sm:$0x1]  ;;  %v933_v22 = vld [vmem:[#allocation8 + $0x18] sm:$0xff]  ;;  %v930_v26 = vld [vmem:[#allocation8] sm:$0xff]  ;;  %vm1143_vm6 = vcmask 519168   ;;  %vm2718_vm7 = vcmask 1043456  }
  0x60   :  { %3992 = vmatprep.subr.msk.bf16.mxu0 %vm4709_vm2, %v3990_v9  ;;  %v514_v23 = vld [vmem:[#allocation4 + $0x10] sm:$0xf]  ;;  %v4017_v24 = vpack.c.bf16 %v725_v20, %v4715_v4  ;;  %v4743_v25 = vpack.c.bf16 %v933_v22, %v931_v21  ;;  %v935_v28 = vld [vmem:[#allocation8 + $0x28] sm:$0xff]  ;;  %v937_v29 = vld [vmem:[#allocation8 + $0x38] sm:$0xff]  ;;  %v4784_v50 = vsub.s32 0, %v105_v49  ;;  %v4789_v52 = vsub.s32 1, %v105_v49 }
  0x61   :  { %v932_v27 = vld [vmem:[#allocation8 + $0x10] sm:$0xff]  ;;  %v722_v30 = vld [vmem:[#allocation4 + $0x18] sm:$0xf]  ;;  %v4752_v32 = vpack.c.bf16 %v937_v29, %v935_v28  ;;  %v934_v33 = vld [vmem:[#allocation8 + $0x20] sm:$0xff] }
  0x62   :  { %3454 = vmatmul.mubr.msk.f32.vlgmr.msra.gmra.mrb[0].mxu0 %vm114_vm3, %v97_v12  ;;  %v4749_v31 = vpack.c.bf16 %v932_v27, %v930_v26  ;;  %v936_v34 = vld [vmem:[#allocation8 + $0x30] sm:$0xff]  ;;  %v939_v35 = vld [vmem:[#allocation8 + $0x48] sm:$0xff]  ;;  %v941_v36 = vld [vmem:[#allocation8 + $0x58] sm:$0xff] }
  0x63   :  { %3995 = vmatpush1.bf16.msk.msra.mxu0 %vm4709_vm2, %v3993_v13  ;;  %396 = vmatprep.mubr.f32.mxu0 %v4584_v0  ;;  %v4756_v37 = vpack.c.bf16 %v936_v34, %v934_v33  ;;  %v4760_v38 = vpack.c.bf16 %v941_v36, %v939_v35  ;;  %v938_v39 = vld [vmem:[#allocation8 + $0x40] sm:$0xff]  ;;  %v940_v40 = vld [vmem:[#allocation8 + $0x50] sm:$0xff]  ;;  %v943_v41 = vld [vmem:[#allocation8 + $0x68] sm:$0xff] }
  0x64   :  { %4004 = vmatprep.subr.msk.bf16.mxu0 %vm4709_vm2, %v4002_v14  ;;  %v945_v42 = vld [vmem:[#allocation8 + $0x78] sm:$0xff]  ;;  %v4763_v43 = vpack.c.bf16 %v940_v40, %v938_v39  ;;  %v942_v45 = vld [vmem:[#allocation8 + $0x60] sm:$0xff]  ;;  %v944_v46 = vld [vmem:[#allocation8 + $0x70] sm:$0xff] }
  0x65   :  { %v4766_v44 = vpack.c.bf16 %v945_v42, %v943_v41  ;;  %v4769_v47 = vpack.c.bf16 %v944_v46, %v942_v45  ;;  %v102_v51 = vld [vmem:[%s5299_s3] sm:$0x3]  ;;  %v206_v41 = vld [vmem:[#allocation6 + $0x18] sm:$0x1]  ;;  %v205_v42 = vld [vmem:[#allocation6 + $0x10] sm:$0x1] }
  0x66   :  { %3460 = vmatmul.mubr.msk.f32.vlgmr.msra.gmra.mrb[2].mxu0 %vm114_vm3, %v306_v17  ;;  %v107_v53 = vrot.slane %v102_v51, %v4784_v50  ;;  %v111_v54 = vrot.slane %v102_v51, %v4789_v52  ;;  %v311_v55 = vld [vmem:[%s5299_s3] sm:$0x3]  ;;  %v414_v45 = vld [vmem:[#allocation6 + $0x18] sm:$0x1]  ;;  %v3984_v46 = vpack.c.bf16 %v206_v41, %v4713_v2  ;;  %v3987_v48 = vpack.c.bf16 %v205_v42, %v4715_v4  ;;  %v413_v51 = vld [vmem:[#allocation6 + $0x10] sm:$0x1] }
  0x67   :  { %4007 = vmatpush1.bf16.msk.msra.mxu0 %vm4709_vm2, %v4005_v18  ;;  %604 = vmatprep.mubr.f32.mxu0 %v4584_v0  ;;  %v316_v59 = vrot.slane %v311_v55, %v4784_v50  ;;  %v320_v61 = vrot.slane %v311_v55, %v4789_v52  ;;  %v519_v62 = vld [vmem:[%s5299_s3] sm:$0x3]  ;;  %v3996_v49 = vpack.c.bf16 %v414_v45, %v4713_v2 }
  0x68   :  { %4016 = vmatprep.subr.msk.bf16.mxu0 %vm4709_vm2, %v4014_v19  ;;  %v524_v7 = vrot.slane %v519_v62, %v4784_v50  ;;  %v528_v9 = vrot.slane %v519_v62, %v4789_v52  ;;  %v727_v10 = vld [vmem:[%s5299_s3] sm:$0x3]  ;;  %3986 = vmatprep.subr.msk.bf16.mxu1 %vm4709_vm2, %v3984_v46  ;;  %v3999_v55 = vpack.c.bf16 %v413_v51, %v4715_v4  ;;  %v829_v62 = vld [vmem:[#allocation6 + $0x10] sm:$0x1] }
  0x69   :  { %v732_v15 = vrot.slane %v727_v10, %v4784_v50  ;;  %v736_v17 = vrot.slane %v727_v10, %v4789_v52  ;;  %3989 = vmatpush1.bf16.msk.msra.mxu1 %vm4709_vm2, %v3987_v48  ;;  %v4586_v10 = vmov 0.0|0.0   ;;  %v1058_v1 = vld [vmem:[#allocation9 + $0x20] sm:$0xff] }
  0x6a   :  { %3466 = vmatmul.mubr.msk.f32.vlgmr.msra.gmra.mrb[4].mxu0 %vm114_vm3, %v514_v23  ;;  %3998 = vmatprep.subr.msk.bf16.mxu1 %vm4709_vm2, %v3996_v49  ;;  %v623_v48 = vld [vmem:[%s5299_s3] sm:$0x3] }
  0x6b   :  { %4019 = vmatpush1.bf16.msk.msra.mxu0 %vm4709_vm2, %v4017_v24  ;;  %812 = vmatprep.mubr.f32.mxu0 %v4584_v0 }
  0x6c   :  { %4027 = vmatprep.subr.bf16.mxu0 %v4743_v25 }
  0x6e   :  { %3472 = vmatmul.mubr.msk.f32.vlgmr.msra.gmra.mrb[6].mxu0 %vm114_vm3, %v722_v30 }
  0x6f   :  { %4029 = vmatpush1.bf16.msra.mxu0 %v4749_v31  ;;  %1014 = vmatprep.mubr.f32.mxu0 %v4584_v0 }
  0x70   :  { %4031 = vmatprep.subr.bf16.mxu0 %v4752_v32 }
  0x73   :  { %4033 = vmatpush1.bf16.msra.mxu0 %v4756_v37 }
  0x74   :  { %4035 = vmatprep.subr.bf16.mxu0 %v4760_v38 }
  0x77   :  { %4037 = vmatpush1.bf16.msra.mxu0 %v4763_v43 }
  0x78   :  { %4039 = vmatprep.subr.bf16.mxu0 %v4766_v44 }
  0x7b   :  { %4041 = vmatpush1.bf16.msra.mxu0 %v4769_v47 }
  0x7c   :  { %4055 = vmatprep.subr.bf16.mxu0 %v4743_v25 }
  0x7e   :  { %1015 = vmatmul.mubr.f32.vlgmr.msra.gmra.mrb[8].mxu0 %v4584_v0 }
  0x7f   :  { %4057 = vmatpush1.bf16.msra.mxu0 %v4749_v31  ;;  %1226 = vmatprep.mubr.f32.mxu0 %v4584_v0 }
  0x80   :  { %4059 = vmatprep.subr.bf16.mxu0 %v4752_v32 }
  0x83   :  { %4061 = vmatpush1.bf16.msra.mxu0 %v4756_v37 }
  0x84   :  { %4063 = vmatprep.subr.bf16.mxu0 %v4760_v38 }
  0x87   :  { %4065 = vmatpush1.bf16.msra.mxu0 %v4763_v43 }
  0x88   :  { %4067 = vmatprep.subr.bf16.mxu0 %v4766_v44 }
  0x8b   :  { %4069 = vmatpush1.bf16.msra.mxu0 %v4769_v47 }
  0x8c   :  { %4083 = vmatprep.subr.bf16.mxu0 %v4743_v25 }
 0x135   :  { %v191_v56 = vpop.f32.mrb[0].mxu0 }
 0x136   :  { %v192_v57 = vadd.f32 %v191_v56, %v107_v53  ;;  %v193_v58 = vpop.f32.mrb[1].mxu0  ;;  %v622_v53 = vld [vmem:[#allocation6 + $0x18] sm:$0x1] }
 0x137   :  { %v194_v60 = vadd.f32 %v193_v58, %v111_v54  ;;  %v202_v54 = vld [vmem:[#allocation4 + $0x4] sm:$0xf]  ;;  %v4008_v56 = vpack.c.bf16 %v622_v53, %v4713_v2  ;;  %v830_v58 = vld [vmem:[#allocation6 + $0x18] sm:$0x1] }
 0x138   :  { %3457 = vmatmul.mubr.msk.f32.vlgmr.msra.gmra.mrb[0].mxu1 %vm114_vm3, %v202_v54 }
 0x139   :  { %v198_v63 = vcombine.low %v192_v57, %v194_v60  ;;  %v398_v3 = vpop.f32.mrb[2].mxu0  ;;  %v621_v57 = vld [vmem:[#allocation6 + $0x10] sm:$0x1]  ;;  %4001 = vmatpush1.bf16.msk.msra.mxu1 %vm4709_vm2, %v3999_v55  ;;  %500 = vmatprep.mubr.f32.mxu1 %v4584_v0  ;;  %v628_v55 = vrot.slane %v623_v48, %v4784_v50 }
 0x13a   :  { %v4801_v5 = vadd.f32 %v398_v3, %v316_v59  ;;  %v400_v6 = vpop.f32.mrb[3].mxu0  ;;  %v410_v59 = vld [vmem:[#allocation4 + $0xc] sm:$0xf]  ;;  %v4011_v60 = vpack.c.bf16 %v621_v57, %v4715_v4  ;;  %4010 = vmatprep.subr.msk.bf16.mxu1 %vm4709_vm2, %v4008_v56  ;;  %v4023_v3 = vpack.c.bf16 %v829_v62, %v4715_v4  ;;  %v1057_v4 = vld [vmem:[#allocation9 + $0x18] sm:$0xff]  ;;  %v632_v57 = vrot.slane %v623_v48, %v4789_v52 }
 0x13b   :  { %v4804_v8 = vadd.f32 %v400_v6, %v320_v61  ;;  %v4020_v61 = vpack.c.bf16 %v830_v58, %v4713_v2  ;;  %v1054_v6 = vld [vmem:[#allocation9] sm:$0xff]  ;;  %v826_v2 = vld [vmem:[#allocation4 + $0x1c] sm:$0xf] }
 0x13c   :  { %3463 = vmatmul.mubr.msk.f32.vlgmr.msra.gmra.mrb[2].mxu1 %vm114_vm3, %v410_v59  ;;  %v831_v58 = vld [vmem:[%s5299_s3] sm:$0x3] }
 0x13d   :  { %v405_v11 = vcombine.low %v4801_v5, %v4804_v8  ;;  %v606_v12 = vpop.f32.mrb[4].mxu0  ;;  %4013 = vmatpush1.bf16.msk.msra.mxu1 %vm4709_vm2, %v4011_v60  ;;  %708 = vmatprep.mubr.f32.mxu1 %v4584_v0 }
 0x13e   :  { %v4812_v13 = vadd.f32 %v606_v12, %v524_v7  ;;  %v608_v14 = vpop.f32.mrb[5].mxu0  ;;  %4022 = vmatprep.subr.msk.bf16.mxu1 %vm4709_vm2, %v4020_v61  ;;  %v1055_v7 = vld [vmem:[#allocation9 + $0x8] sm:$0xff]  ;;  %v1056_v12 = vld [vmem:[#allocation9 + $0x10] sm:$0xff] }
 0x13f   :  { %v4815_v16 = vadd.f32 %v608_v14, %v528_v9  ;;  %v4861_v9 = vpack.c.bf16 %v1055_v7, %v1054_v6  ;;  %v4866_v14 = vpack.c.bf16 %v1057_v4, %v1056_v12  ;;  %v840_v6 = vrot.slane %v831_v58, %v4789_v52 }
 0x141   :  { %v613_v18 = vcombine.low %v4812_v13, %v4815_v16  ;;  %v814_v19 = vpop.f32.mrb[6].mxu0  ;;  %v2000_v13 = vld [vmem:[#allocation8 + $0x30] sm:$0xff]  ;;  %v2003_v16 = vld [vmem:[#allocation8 + $0x48] sm:$0xff] }
 0x142   :  { %v4820_v20 = vadd.f32 %v814_v19, %v732_v15  ;;  %v816_v21 = vpop.f32.mrb[7].mxu0  ;;  %v1059_v15 = vld [vmem:[#allocation9 + $0x28] sm:$0xff]  ;;  %v1060_v19 = vld [vmem:[#allocation9 + $0x30] sm:$0xff] }
 0x143   :  { %v4822_v22 = vadd.f32 %v816_v21, %v736_v17  ;;  %v4870_v17 = vpack.c.bf16 %v1059_v15, %v1058_v1  ;;  %v1061_v21 = vld [vmem:[#allocation9 + $0x38] sm:$0xff] }
 0x145   :  { %v821_v23 = vcombine.low %v4820_v20, %v4822_v22  ;;  %v2327_v20 = vld [vmem:[#allocation9 + $0x8] sm:$0xff]  ;;  %v2328_v22 = vld [vmem:[#allocation9 + $0x10] sm:$0xff] }
 0x151   :  { %v1016_v24 = vpop.f32.mrb[8].mxu0 }
 0x152   :  { %v1018_v26 = vpop.f32.mrb[9].mxu0 }
 0x153   :  { %v1023_v27 = vcombine.low %v1016_v24, %v1018_v26  ;;  %v4874_v24 = vpack.c.bf16 %v1061_v21, %v1060_v19 }
 0x155   :  { %v1025_v28 = vadd.f32 %v1023_v27, %v198_v63  ;;  %v618_v63 = vld [vmem:[#allocation4 + $0x14] sm:$0xf] }
 0x156   :  { %3469 = vmatmul.mubr.msk.f32.vlgmr.msra.gmra.mrb[4].mxu1 %vm114_vm3, %v618_v63  ;;  %v836_v63 = vrot.slane %v831_v58, %v4784_v50 }
 0x157   :  { %1033 = vrot.lane.b32.xlu0 %v1025_v28, %s4580_s4  ;;  %v3476_v29 = vmul.f32 -1.442695, %v1025_v28  ;;  %4025 = vmatpush1.bf16.msk.msra.mxu1 %vm4709_vm2, %v4023_v3 }
 0x158   :  { %916 = vmatprep.mubr.f32.mxu1 %v4584_v0  ;;  %4042 = vmatprep.subr.bf16.mxu1 %v4586_v10 }
 0x159   :  { %4361 = vpow2.f32 %v3476_v29 }
 0x15a   :  { %3475 = vmatmul.mubr.msk.f32.vlgmr.msra.gmra.mrb[6].mxu1 %vm114_vm3, %v826_v2 }
 0x15b   :  { %4044 = vmatpush3.bf16.msra.mxu1 %v4861_v9  ;;  %3690 = vmatprep.mubr.msk.f32.mxu1 %vm4587_vm4, %v4584_v0 }
 0x15c   :  { %4045 = vmatprep.subr.bf16.mxu1 %v4586_v10 }
 0x15f   :  { %4047 = vmatpush3.bf16.msra.mxu1 %v4866_v14 }
 0x160   :  { %4048 = vmatprep.subr.bf16.mxu1 %v4586_v10 }
 0x163   :  { %v4362_v30 = vpop.eup %4361  ;;  %4050 = vmatpush3.bf16.msra.mxu1 %v4870_v17 }
 0x164   :  { %v1029_v33 = vadd.f32 1.0, %v4362_v30  ;;  %4051 = vmatprep.subr.bf16.mxu1 %v4586_v10  ;;  %v207_v30 = vld [vmem:[%s5299_s3] sm:$0x3] }
 0x166   :  { %4363 = vrcp.f32 %v1029_v33  ;;  %v212_v33 = vrot.slane %v207_v30, %v4784_v50 }
 0x167   :  { %4053 = vmatpush3.bf16.msra.mxu1 %v4874_v24 }
 0x168   :  { %4070 = vmatprep.subr.bf16.mxu1 %v4586_v10 }
 0x170   :  { %v4827_v36 = vpop.eup %4363 }
 0x171   :  { %v1038_v26 = vmul.f32 0.0, %v4827_v36  ;;  %v1047_v19 = vrot.slane %v4827_v36, 4 }
 0x1c9   :  { %v1034_v34 = vpop.permute.xlu0 %1033 }
 0x1ca   :  { %v1035_v35 = vrot.slane %v1034_v34, 4  ;;  %v216_v34 = vrot.slane %v207_v30, %v4789_v52 }
 0x1cc   :  { %4365 = vtanh.f32 %v1035_v35  ;;  %v415_v35 = vld [vmem:[%s5299_s3] sm:$0x3] }
 0x1cd   :  { %v420_v42 = vrot.slane %v415_v35, %v4784_v50  ;;  %v424_v46 = vrot.slane %v415_v35, %v4789_v52  ;;  %v4949_v52 = vld [vmem:[%s5301_s5] ss:$0 sm:$0xff] }
 0x1d6   :  { %v4366_v39 = vpop.eup %4365 }
 0x1d7   :  { %v1039_v40 = vmul.f32 %v4366_v39, %v4827_v36 }
 0x1d9   :  { %1041 = vrot.lane.b32.xlu0 %v1039_v40, %s4580_s4 }
 0x20b   :  { %v294_v39 = vpop.f32.mrb[0].mxu1 }
 0x20c   :  { %v295_v40 = vadd.f32 %v294_v39, %v212_v33  ;;  %v296_v41 = vpop.f32.mrb[1].mxu1 }
 0x20d   :  { %v297_v45 = vadd.f32 %v296_v41, %v216_v34 }
 0x20f   :  { %v301_v49 = vcombine.low %v295_v40, %v297_v45  ;;  %v502_v51 = vpop.f32.mrb[2].mxu1 }
 0x210   :  { %v4899_v53 = vadd.f32 %v502_v51, %v420_v42  ;;  %v504_v54 = vpop.f32.mrb[3].mxu1 }
 0x211   :  { %v4902_v56 = vadd.f32 %v504_v54, %v424_v46 }
 0x213   :  { %v509_v59 = vcombine.low %v4899_v53, %v4902_v56 }
 0x229   :  { %v710_v60 = vpop.f32.mrb[4].mxu1 }
 0x22a   :  { %v4910_v61 = vadd.f32 %v710_v60, %v628_v55  ;;  %v712_v62 = vpop.f32.mrb[5].mxu1 }
 0x22b   :  { %v4913_v3 = vadd.f32 %v712_v62, %v632_v57 }
 0x22d   :  { %v717_v7 = vcombine.low %v4910_v61, %v4913_v3  ;;  %v918_v2 = vpop.f32.mrb[6].mxu1  ;;  %v2209_v61 = vld [vmem:[#allocation8 + $0x18] sm:$0xff]  ;;  %v2206_v3 = vld [vmem:[#allocation8] sm:$0xff] }
 0x22e   :  { %v4918_v12 = vadd.f32 %v918_v2, %v836_v63  ;;  %v920_v4 = vpop.f32.mrb[7].mxu1 }
 0x22f   :  { %v4920_v1 = vadd.f32 %v920_v4, %v840_v6 }
 0x231   :  { %v925_v15 = vcombine.low %v4918_v12, %v4920_v1 }
 0x24b   :  { %v1042_v27 = vpop.permute.xlu0 %1041 }
 0x24c   :  { %v4880_v28 = vadd.f32 %v1042_v27, %v1038_v26 }
 0x24e   :  { %4367 = vtanh.f32 %v4880_v28 }
 0x258   :  { %v4368_v29 = vpop.eup %4367 }
 0x259   :  { %1050 = vrot.lane.b32.xlu1 %v4368_v29, %s4580_s4 }
 0x2cb   :  { %v1051_v21 = vpop.permute.xlu1 %1050 }
 0x2cc   :  { %v1053_v50 = vmul.f32 %v1051_v21, %v1047_v19 }
 0x2ce   :  { %3691 = vmatmul.mubr.msk.f32.vlgmr.msra.gmra.mrb[8].mxu1 %vm946_vm5, %v1053_v50  ;;  %3479 = vmatmul.mubr.msk.f32.vlgmr.msra.gmra.mrb[10].mxu0 %vm946_vm5, %v1053_v50 }
 0x2cf   :  { %4072 = vmatpush3.bf16.msra.mxu1 %v4861_v9  ;;  %4085 = vmatpush1.bf16.msra.mxu0 %v4749_v31 }
 0x2d0   :  { %4073 = vmatprep.subr.bf16.mxu1 %v4586_v10  ;;  %4087 = vmatprep.subr.bf16.mxu0 %v4752_v32 }
 0x2d1   :  { %3709 = vmatprep.mubr.msk.f32.mxu1 %vm4587_vm4, %v4584_v0  ;;  %1438 = vmatprep.mubr.f32.mxu0 %v4584_v0 }
 0x2d3   :  { %4075 = vmatpush3.bf16.msra.mxu1 %v4866_v14  ;;  %4089 = vmatpush1.bf16.msra.mxu0 %v4756_v37 }
 0x2d4   :  { %4076 = vmatprep.subr.bf16.mxu1 %v4586_v10  ;;  %4091 = vmatprep.subr.bf16.mxu0 %v4760_v38 }
 0x2d7   :  { %4078 = vmatpush3.bf16.msra.mxu1 %v4870_v17  ;;  %4093 = vmatpush1.bf16.msra.mxu0 %v4763_v43 }
 0x2d8   :  { %4079 = vmatprep.subr.bf16.mxu1 %v4586_v10  ;;  %4095 = vmatprep.subr.bf16.mxu0 %v4766_v44 }
 0x2db   :  { %4097 = vmatpush1.bf16.msra.mxu0 %v4769_v47  ;;  %4081 = vmatpush3.bf16.msra.mxu1 %v4874_v24 }
 0x2dc   :  { %4098 = vmatprep.subr.bf16.mxu1 %v4586_v10  ;;  %4111 = vmatprep.subr.bf16.mxu0 %v4743_v25 }
 0x3a1   :  { %v1138_v36 = vpop.f32.mrb[8].mxu1  ;;  %v1228_v26 = vpop.f32.mrb[10].mxu0 }
 0x3a2   :  { %v1139_v27 = vadd.f32 %v4949_v52, %v1138_v36  ;;  %v3692_v29 = vpop.f32.mrb[9].mxu1  ;;  %v1230_v30 = vpop.f32.mrb[11].mxu0 }
 0x3a3   :  { %v1235_v33 = vcombine.low %v1228_v26, %v1230_v30 }
 0x3a4   :  { %v1142_v34 = vmax.f32 %v1139_v27, 0.0 }
 0x3a5   :  { %v1237_v35 = vadd.f32 %v1235_v33, %v301_v49 }
 0x3a6   :  { %1144 = vst.msk [vmem:[#allocation3] sm:$0xf] %vm1143_vm6, %v1142_v34 }
 0x3a7   :  { %1245 = vrot.lane.b32.xlu1 %v1237_v35, %s4580_s4  ;;  %v3480_v39 = vmul.f32 -1.442695, %v1237_v35 }
 0x3a9   :  { %4369 = vpow2.f32 %v3480_v39 }
 0x3b3   :  { %v4370_v40 = vpop.eup %4369 }
 0x3b4   :  { %v1241_v41 = vadd.f32 1.0, %v4370_v40 }
 0x3b6   :  { %4371 = vrcp.f32 %v1241_v41 }
 0x3c0   :  { %v4372_v46 = vpop.eup %4371 }
 0x3c1   :  { %v1250_v54 = vmul.f32 %v4372_v46, %v4880_v28  ;;  %v1259_v58 = vrot.slane %v4372_v46, 4 }
 0x419   :  { %v1246_v42 = vpop.permute.xlu1 %1245 }
 0x41a   :  { %v1247_v45 = vrot.slane %v1246_v42, 4 }
 0x41c   :  { %4373 = vtanh.f32 %v1247_v45 }
 0x426   :  { %v4374_v48 = vpop.eup %4373 }
 0x427   :  { %v1251_v51 = vmul.f32 %v4374_v48, %v4372_v46 }
 0x429   :  { %1253 = vrot.lane.b32.xlu0 %v1251_v51, %s4580_s4 }
 0x49b   :  { %v1254_v49 = vpop.permute.xlu0 %1253 }
 0x49c   :  { %v1256_v55 = vadd.f32 %v1254_v49, %v1250_v54 }
 0x49e   :  { %4375 = vtanh.f32 %v1256_v55 }
 0x4a8   :  { %v4376_v57 = vpop.eup %4375 }
 0x4a9   :  { %1262 = vrot.lane.b32.xlu1 %v4376_v57, %s4580_s4 }
 0x51b   :  { %v1263_v60 = vpop.permute.xlu1 %1262 }
 0x51c   :  { %v1265_v62 = vmul.f32 %v1263_v60, %v1259_v58 }
 0x51e   :  { %3710 = vmatmul.mubr.msk.f32.vlgmr.msra.gmra.mrb[10].mxu1 %vm946_vm5, %v1265_v62  ;;  %3483 = vmatmul.mubr.msk.f32.vlgmr.msra.gmra.mrb[12].mxu0 %vm946_vm5, %v1265_v62 }
 0x51f   :  { %4100 = vmatpush3.bf16.msra.mxu1 %v4861_v9  ;;  %4113 = vmatpush1.bf16.msra.mxu0 %v4749_v31 }
 0x520   :  { %4101 = vmatprep.subr.bf16.mxu1 %v4586_v10  ;;  %4115 = vmatprep.subr.bf16.mxu0 %v4752_v32 }
 0x521   :  { %3728 = vmatprep.mubr.msk.f32.mxu1 %vm4587_vm4, %v4584_v0  ;;  %1650 = vmatprep.mubr.f32.mxu0 %v4584_v0 }
 0x523   :  { %4103 = vmatpush3.bf16.msra.mxu1 %v4866_v14  ;;  %4117 = vmatpush1.bf16.msra.mxu0 %v4756_v37 }
 0x524   :  { %4104 = vmatprep.subr.bf16.mxu1 %v4586_v10  ;;  %4119 = vmatprep.subr.bf16.mxu0 %v4760_v38 }
 0x527   :  { %4106 = vmatpush3.bf16.msra.mxu1 %v4870_v17  ;;  %4121 = vmatpush1.bf16.msra.mxu0 %v4763_v43 }
 0x528   :  { %4107 = vmatprep.subr.bf16.mxu1 %v4586_v10  ;;  %4123 = vmatprep.subr.bf16.mxu0 %v4766_v44 }
 0x52b   :  { %4125 = vmatpush1.bf16.msra.mxu0 %v4769_v47  ;;  %4109 = vmatpush3.bf16.msra.mxu1 %v4874_v24 }
 0x52c   :  { %4126 = vmatprep.subr.bf16.mxu1 %v4586_v10  ;;  %4139 = vmatprep.subr.bf16.mxu0 %v4743_v25 }
 0x5f1   :  { %v1350_v28 = vpop.f32.mrb[10].mxu1  ;;  %v1440_v63 = vpop.f32.mrb[12].mxu0 }
 0x5f2   :  { %v1351_v6 = vadd.f32 %v4949_v52, %v1350_v28  ;;  %v3711_v2 = vpop.f32.mrb[11].mxu1  ;;  %v1442_v4 = vpop.f32.mrb[13].mxu0 }
 0x5f3   :  { %v1447_v19 = vcombine.low %v1440_v63, %v1442_v4 }
 0x5f4   :  { %v1354_v21 = vmax.f32 %v1351_v6, 0.0 }
 0x5f5   :  { %v1449_v50 = vadd.f32 %v1447_v19, %v405_v11 }
 0x5f6   :  { %1356 = vst.msk [vmem:[#allocation3 + $0x4] sm:$0xf] %vm1143_vm6, %v1354_v21 }
 0x5f7   :  { %1457 = vrot.lane.b32.xlu0 %v1449_v50, %s4580_s4  ;;  %v3484_v36 = vmul.f32 -1.442695, %v1449_v50 }
 0x5f9   :  { %4377 = vpow2.f32 %v3484_v36 }
 0x603   :  { %v4378_v26 = vpop.eup %4377 }
 0x604   :  { %v1453_v27 = vadd.f32 1.0, %v4378_v26 }
 0x606   :  { %4379 = vrcp.f32 %v1453_v27 }
 0x610   :  { %v4380_v33 = vpop.eup %4379 }
 0x611   :  { %v1462_v39 = vmul.f32 %v4380_v33, %v1256_v55  ;;  %v1471_v40 = vrot.slane %v4380_v33, 4 }
 0x669   :  { %v1458_v29 = vpop.permute.xlu0 %1457 }
 0x66a   :  { %v1459_v30 = vrot.slane %v1458_v29, 4 }
 0x66c   :  { %4381 = vtanh.f32 %v1459_v30 }
 0x676   :  { %v4382_v34 = vpop.eup %4381 }
 0x677   :  { %v1463_v35 = vmul.f32 %v4382_v34, %v4380_v33 }
 0x679   :  { %1465 = vrot.lane.b32.xlu1 %v1463_v35, %s4580_s4 }
 0x6eb   :  { %v1466_v5 = vpop.permute.xlu1 %1465 }
 0x6ec   :  { %v1468_v8 = vadd.f32 %v1466_v5, %v1462_v39  ;;  %v1998_v5 = vld [vmem:[#allocation8 + $0x20] sm:$0xff] }
 0x6ee   :  { %4383 = vtanh.f32 %v1468_v8 }
 0x6f8   :  { %v4384_v11 = vpop.eup %4383 }
 0x6f9   :  { %1474 = vrot.lane.b32.xlu0 %v4384_v11, %s4580_s4  ;;  %v2002_v11 = vld [vmem:[#allocation8 + $0x40] sm:$0xff] }
 0x76b   :  { %v1475_v41 = vpop.permute.xlu0 %1474 }
 0x76c   :  { %v1477_v42 = vmul.f32 %v1475_v41, %v1471_v40  ;;  %v2004_v40 = vld [vmem:[#allocation8 + $0x50] sm:$0xff] }
 0x76e   :  { %3729 = vmatmul.mubr.msk.f32.vlgmr.msra.gmra.mrb[12].mxu1 %vm946_vm5, %v1477_v42  ;;  %3487 = vmatmul.mubr.msk.f32.vlgmr.msra.gmra.mrb[14].mxu0 %vm946_vm5, %v1477_v42  ;;  %v2007_v42 = vld [vmem:[#allocation8 + $0x68] sm:$0xff] }
 0x76f   :  { %4128 = vmatpush3.bf16.msra.mxu1 %v4861_v9  ;;  %4141 = vmatpush1.bf16.msra.mxu0 %v4749_v31 }
 0x770   :  { %4129 = vmatprep.subr.bf16.mxu1 %v4586_v10  ;;  %4143 = vmatprep.subr.bf16.mxu0 %v4752_v32 }
 0x771   :  { %3747 = vmatprep.mubr.msk.f32.mxu1 %vm4587_vm4, %v4584_v0  ;;  %1862 = vmatprep.mubr.f32.mxu0 %v4584_v0 }
 0x773   :  { %4131 = vmatpush3.bf16.msra.mxu1 %v4866_v14  ;;  %4145 = vmatpush1.bf16.msra.mxu0 %v4756_v37 }
 0x774   :  { %4132 = vmatprep.subr.bf16.mxu1 %v4586_v10  ;;  %4147 = vmatprep.subr.bf16.mxu0 %v4760_v38 }
 0x777   :  { %4134 = vmatpush3.bf16.msra.mxu1 %v4870_v17  ;;  %4149 = vmatpush1.bf16.msra.mxu0 %v4763_v43 }
 0x778   :  { %4135 = vmatprep.subr.bf16.mxu1 %v4586_v10  ;;  %4151 = vmatprep.subr.bf16.mxu0 %v4766_v44 }
 0x77b   :  { %4153 = vmatpush1.bf16.msra.mxu0 %v4769_v47  ;;  %4137 = vmatpush3.bf16.msra.mxu1 %v4874_v24 }
 0x77c   :  { %4154 = vmatprep.subr.bf16.mxu1 %v4586_v10  ;;  %4167 = vmatprep.subr.bf16.mxu0 %v4743_v25 }
 0x841   :  { %v1562_v37 = vpop.f32.mrb[12].mxu1  ;;  %v1652_v45 = vpop.f32.mrb[14].mxu0 }
 0x842   :  { %v1563_v38 = vadd.f32 %v4949_v52, %v1562_v37  ;;  %v3730_v46 = vpop.f32.mrb[13].mxu1  ;;  %v1654_v48 = vpop.f32.mrb[15].mxu0  ;;  %v2009_v37 = vld [vmem:[#allocation8 + $0x78] sm:$0xff] }
 0x843   :  { %v1659_v51 = vcombine.low %v1652_v45, %v1654_v48  ;;  %v5045_v45 = vpack.c.bf16 %v2004_v40, %v2002_v11  ;;  %v2006_v46 = vld [vmem:[#allocation8 + $0x60] sm:$0xff]  ;;  %v2008_v48 = vld [vmem:[#allocation8 + $0x70] sm:$0xff] }
 0x844   :  { %v1566_v43 = vmax.f32 %v1563_v38, 0.0  ;;  %v5048_v38 = vpack.c.bf16 %v2009_v37, %v2007_v42 }
 0x845   :  { %v1661_v44 = vadd.f32 %v1659_v51, %v509_v59  ;;  %v5051_v51 = vpack.c.bf16 %v2008_v48, %v2006_v46 }
 0x846   :  { %1568 = vst.msk [vmem:[#allocation3 + $0x8] sm:$0xf] %vm1143_vm6, %v1566_v43 }
 0x847   :  { %1669 = vrot.lane.b32.xlu1 %v1661_v44, %s4580_s4  ;;  %v3488_v47 = vmul.f32 -1.442695, %v1661_v44 }
 0x849   :  { %4385 = vpow2.f32 %v3488_v47 }
 0x853   :  { %v4386_v54 = vpop.eup %4385 }
 0x854   :  { %v1665_v25 = vadd.f32 1.0, %v4386_v54 }
 0x856   :  { %4387 = vrcp.f32 %v1665_v25 }
 0x860   :  { %v4388_v57 = vpop.eup %4387 }
 0x861   :  { %v1674_v62 = vmul.f32 %v4388_v57, %v1468_v8  ;;  %v1683_v28 = vrot.slane %v4388_v57, 4  ;;  %v2005_v8 = vld [vmem:[#allocation8 + $0x58] sm:$0xff] }
 0x862   :  { %v5042_v41 = vpack.c.bf16 %v2005_v8, %v2003_v16 }
 0x8b9   :  { %v1670_v49 = vpop.permute.xlu1 %1669 }
 0x8ba   :  { %v1671_v55 = vrot.slane %v1670_v49, 4 }
 0x8bc   :  { %4389 = vtanh.f32 %v1671_v55 }
 0x8c6   :  { %v4390_v58 = vpop.eup %4389 }
 0x8c7   :  { %v1675_v60 = vmul.f32 %v4390_v58, %v4388_v57 }
 0x8c9   :  { %1677 = vrot.lane.b32.xlu0 %v1675_v60, %s4580_s4 }
 0x93b   :  { %v1678_v53 = vpop.permute.xlu0 %1677 }
 0x93c   :  { %v5014_v56 = vadd.f32 %v1678_v53, %v1674_v62 }
 0x93e   :  { %4391 = vtanh.f32 %v5014_v56 }
 0x948   :  { %v4392_v59 = vpop.eup %4391 }
 0x949   :  { %1686 = vrot.lane.b32.xlu1 %v4392_v59, %s4580_s4 }
 0x9bb   :  { %v1687_v63 = vpop.permute.xlu1 %1686 }
 0x9bc   :  { %v1689_v6 = vmul.f32 %v1687_v63, %v1683_v28 }
 0x9be   :  { %3748 = vmatmul.mubr.msk.f32.vlgmr.msra.gmra.mrb[14].mxu1 %vm946_vm5, %v1689_v6  ;;  %3491 = vmatmul.mubr.msk.f32.vlgmr.msra.gmra.mrb[16].mxu0 %vm946_vm5, %v1689_v6 }
 0x9bf   :  { %4156 = vmatpush3.bf16.msra.mxu1 %v4861_v9  ;;  %4169 = vmatpush1.bf16.msra.mxu0 %v4749_v31 }
 0x9c0   :  { %4157 = vmatprep.subr.bf16.mxu1 %v4586_v10  ;;  %4171 = vmatprep.subr.bf16.mxu0 %v4752_v32 }
 0x9c1   :  { %3766 = vmatprep.mubr.msk.f32.mxu1 %vm4587_vm4, %v4584_v0  ;;  %2074 = vmatprep.mubr.f32.mxu0 %v4584_v0 }
 0x9c3   :  { %4159 = vmatpush3.bf16.msra.mxu1 %v4866_v14 }
 0x9c4   :  { %4160 = vmatprep.subr.bf16.mxu1 %v4586_v10 }
 0x9c7   :  { %4162 = vmatpush3.bf16.msra.mxu1 %v4870_v17 }
 0x9c8   :  { %4163 = vmatprep.subr.bf16.mxu1 %v4586_v10 }
 0x9cb   :  { %4165 = vmatpush3.bf16.msra.mxu1 %v4874_v24 }
 0x9cc   :  { %4182 = vmatprep.subr.bf16.mxu1 %v4586_v10 }
 0xa91   :  { %v1774_v31 = vpop.f32.mrb[14].mxu1  ;;  %v1864_v2 = vpop.f32.mrb[16].mxu0 }
 0xa92   :  { %v1775_v32 = vadd.f32 %v4949_v52, %v1774_v31  ;;  %v3749_v4 = vpop.f32.mrb[15].mxu1  ;;  %v1866_v19 = vpop.f32.mrb[17].mxu0 }
 0xa93   :  { %v1871_v21 = vcombine.low %v1864_v2, %v1866_v19  ;;  %v2208_v4 = vld [vmem:[#allocation8 + $0x10] sm:$0xff]  ;;  %v2211_v19 = vld [vmem:[#allocation8 + $0x28] sm:$0xff] }
 0xa94   :  { %v1778_v50 = vmax.f32 %v1775_v32, 0.0  ;;  %v2207_v32 = vld [vmem:[#allocation8 + $0x8] sm:$0xff] }
 0xa95   :  { %v1873_v36 = vadd.f32 %v1871_v21, %v613_v18  ;;  %v5040_v18 = vpack.c.bf16 %v2000_v13, %v1998_v5  ;;  %v2213_v21 = vld [vmem:[#allocation8 + $0x38] sm:$0xff] }
 0xa96   :  { %1780 = vst.msk [vmem:[#allocation3 + $0xc] sm:$0xf] %vm1143_vm6, %v1778_v50  ;;  %v4196_v50 = vpack.c.bf16 %v2208_v4, %v2206_v3  ;;  %v2637_v3 = vld [vmem:[#allocation11 + $0x38] sm:$0xff]  ;;  %v2629_v4 = vld [vmem:[#allocation3] sm:$0xf] }
 0xa97   :  { %1881 = vrot.lane.b32.xlu0 %v1873_v36, %s4580_s4  ;;  %v3492_v26 = vmul.f32 -1.442695, %v1873_v36  ;;  %4173 = vmatpush1.bf16.msra.mxu0 %v5040_v18  ;;  %v4198_v36 = vpack.c.bf16 %v2213_v21, %v2211_v19  ;;  %v2833_v19 = vld [vmem:[#allocation3 + $0x8] sm:$0xf] }
 0xa98   :  { %4175 = vmatprep.subr.bf16.mxu0 %v5042_v41 }
 0xa99   :  { %4393 = vpow2.f32 %v3492_v26 }
 0xa9b   :  { %4177 = vmatpush1.bf16.msra.mxu0 %v5045_v45 }
 0xa9c   :  { %4179 = vmatprep.subr.bf16.mxu0 %v5048_v38 }
 0xa9f   :  { %4181 = vmatpush1.bf16.msra.mxu0 %v5051_v51 }
 0xaa3   :  { %v4394_v27 = vpop.eup %4393 }
 0xaa4   :  { %v1877_v29 = vadd.f32 1.0, %v4394_v27 }
 0xaa6   :  { %4395 = vrcp.f32 %v1877_v29 }
 0xab0   :  { %v4396_v34 = vpop.eup %4395 }
 0xab1   :  { %v1886_v43 = vmul.f32 %v4396_v34, %v5014_v56  ;;  %v1895_v25 = vrot.slane %v4396_v34, 4 }
 0xb09   :  { %v1882_v30 = vpop.permute.xlu0 %1881 }
 0xb0a   :  { %v1883_v33 = vrot.slane %v1882_v30, 4 }
 0xb0c   :  { %4397 = vtanh.f32 %v1883_v33 }
 0xb16   :  { %v4398_v35 = vpop.eup %4397 }
 0xb17   :  { %v1887_v39 = vmul.f32 %v4398_v35, %v4396_v34 }
 0xb19   :  { %1889 = vrot.lane.b32.xlu1 %v1887_v39, %s4580_s4 }
 0xb8b   :  { %v1890_v44 = vpop.permute.xlu1 %1889 }
 0xb8c   :  { %v1892_v47 = vadd.f32 %v1890_v44, %v1886_v43  ;;  %v2329_v43 = vld [vmem:[#allocation9 + $0x18] sm:$0xff] }
 0xb8d   :  { %v4214_v44 = vpack.c.bf16 %v2329_v43, %v2328_v22 }
 0xb8e   :  { %4399 = vtanh.f32 %v1892_v47 }
 0xb98   :  { %v4400_v54 = vpop.eup %4399 }
 0xb99   :  { %1898 = vrot.lane.b32.xlu0 %v4400_v54, %s4580_s4  ;;  %v2331_v54 = vld [vmem:[#allocation9 + $0x28] sm:$0xff] }
 0xc0b   :  { %v1899_v49 = vpop.permute.xlu0 %1898 }
 0xc0c   :  { %v1901_v55 = vmul.f32 %v1899_v49, %v1895_v25  ;;  %v2332_v49 = vld [vmem:[#allocation9 + $0x30] sm:$0xff] }
 0xc0e   :  { %3767 = vmatmul.mubr.msk.f32.vlgmr.msra.gmra.mrb[16].mxu1 %vm946_vm5, %v1901_v55  ;;  %3495 = vmatmul.mubr.msk.f32.vlgmr.msra.gmra.mrb[18].mxu0 %vm946_vm5, %v1901_v55  ;;  %v2333_v55 = vld [vmem:[#allocation9 + $0x38] sm:$0xff] }
 0xc0f   :  { %4184 = vmatpush3.bf16.msra.mxu1 %v4861_v9  ;;  %3785 = vmatprep.mubr.msk.f32.mxu1 %vm4587_vm4, %v4584_v0 }
 0xc10   :  { %4185 = vmatprep.subr.bf16.mxu1 %v4586_v10  ;;  %2286 = vmatprep.mubr.f32.mxu0 %v4584_v0 }
 0xc13   :  { %4187 = vmatpush3.bf16.msra.mxu1 %v4866_v14 }
 0xc14   :  { %4188 = vmatprep.subr.bf16.mxu1 %v4586_v10 }
 0xc17   :  { %4190 = vmatpush3.bf16.msra.mxu1 %v4870_v17 }
 0xc18   :  { %4191 = vmatprep.subr.bf16.mxu1 %v4586_v10 }
 0xc1b   :  { %4193 = vmatpush3.bf16.msra.mxu1 %v4874_v24 }
 0xc1c   :  { %4210 = vmatprep.subr.bf16.mxu1 %v4586_v10 }
 0xce1   :  { %v1986_v9 = vpop.f32.mrb[16].mxu1  ;;  %v2076_v57 = vpop.f32.mrb[18].mxu0 }
 0xce2   :  { %v1987_v58 = vadd.f32 %v4949_v52, %v1986_v9  ;;  %v3768_v60 = vpop.f32.mrb[17].mxu1  ;;  %v2078_v62 = vpop.f32.mrb[19].mxu0  ;;  %v4220_v9 = vpack.c.bf16 %v2333_v55, %v2332_v49 }
 0xce3   :  { %v2083_v53 = vcombine.low %v2076_v57, %v2078_v62 }
 0xce4   :  { %v1990_v56 = vmax.f32 %v1987_v58, 0.0 }
 0xce5   :  { %v2085_v14 = vadd.f32 %v2083_v53, %v717_v7  ;;  %v4194_v7 = vpack.c.bf16 %v2209_v61, %v2207_v32  ;;  %v2630_v53 = vld [vmem:[#allocation11] sm:$0xff]  ;;  %v2636_v61 = vld [vmem:[#allocation11 + $0x30] sm:$0xff] }
 0xce6   :  { %1992 = vst.msk [vmem:[#allocation3 + $0x10] sm:$0xf] %vm1143_vm6, %v1990_v56  ;;  %v2631_v56 = vld [vmem:[#allocation11 + $0x8] sm:$0xff] }
 0xce7   :  { %2093 = vrot.lane.b32.xlu1 %v2085_v14, %s4580_s4  ;;  %v3496_v17 = vmul.f32 -1.442695, %v2085_v14  ;;  %4195 = vmatprep.subr.bf16.mxu0 %v4194_v7 }
 0xce8   :  { %4197 = vmatpush1.bf16.msra.mxu0 %v4196_v50 }
 0xce9   :  { %4401 = vpow2.f32 %v3496_v17  ;;  %4199 = vmatprep.subr.bf16.mxu0 %v4198_v36 }
 0xcec   :  { %4201 = vmatpush1.bf16.msra.mxu0 %v5040_v18 }
 0xced   :  { %4203 = vmatprep.subr.bf16.mxu0 %v5042_v41  ;;  %v3037_v21 = vld [vmem:[#allocation3 + $0x10] sm:$0xf] }
 0xcf0   :  { %4205 = vmatpush1.bf16.msra.mxu0 %v5045_v45 }
 0xcf1   :  { %4207 = vmatprep.subr.bf16.mxu0 %v5048_v38 }
 0xcf3   :  { %v4402_v24 = vpop.eup %4401 }
 0xcf4   :  { %v2089_v59 = vadd.f32 1.0, %v4402_v24  ;;  %4209 = vmatpush1.bf16.msra.mxu0 %v5051_v51  ;;  %v5109_v24 = vpack.c.bf16 %v2631_v56, %v2630_v53 }
 0xcf5   :  { %4223 = vmatprep.subr.bf16.mxu0 %v4194_v7  ;;  %v5128_v7 = vpack.c.bf16 %v2637_v3, %v2636_v61 }
 0xcf6   :  { %4403 = vrcp.f32 %v2089_v59 }
 0xd00   :  { %v4404_v6 = vpop.eup %4403 }
 0xd01   :  { %v2098_v26 = vmul.f32 %v4404_v6, %v1892_v47  ;;  %v2107_v33 = vrot.slane %v4404_v6, 4  ;;  %v2330_v47 = vld [vmem:[#allocation9 + $0x20] sm:$0xff] }
 0xd02   :  { %v4217_v25 = vpack.c.bf16 %v2331_v54, %v2330_v47 }
 0xd59   :  { %v2094_v28 = vpop.permute.xlu1 %2093 }
 0xd5a   :  { %v2095_v63 = vrot.slane %v2094_v28, 4  ;;  %v2632_v28 = vld [vmem:[#allocation11 + $0x10] sm:$0xff] }
 0xd5c   :  { %4405 = vtanh.f32 %v2095_v63  ;;  %v2633_v63 = vld [vmem:[#allocation11 + $0x18] sm:$0xff] }
 0xd66   :  { %v4406_v31 = vpop.eup %4405 }
 0xd67   :  { %v2099_v2 = vmul.f32 %v4406_v31, %v4404_v6  ;;  %v5114_v6 = vpack.c.bf16 %v2633_v63, %v2632_v28  ;;  %v2634_v31 = vld [vmem:[#allocation11 + $0x20] sm:$0xff] }
 0xd69   :  { %2101 = vrot.lane.b32.xlu0 %v2099_v2, %s4580_s4  ;;  %v2635_v2 = vld [vmem:[#allocation11 + $0x28] sm:$0xff] }
 0xd6a   :  { %v5123_v32 = vpack.c.bf16 %v2635_v2, %v2634_v31 }
 0xddb   :  { %v2102_v27 = vpop.permute.xlu0 %2101 }
 0xddc   :  { %v2104_v29 = vadd.f32 %v2102_v27, %v2098_v26 }
 0xdde   :  { %4407 = vtanh.f32 %v2104_v29 }
 0xde8   :  { %v4408_v30 = vpop.eup %4407 }
 0xde9   :  { %2110 = vrot.lane.b32.xlu1 %v4408_v30, %s4580_s4 }
 0xe5b   :  { %v2111_v34 = vpop.permute.xlu1 %2110 }
 0xe5c   :  { %v2113_v35 = vmul.f32 %v2111_v34, %v2107_v33 }
 0xe5e   :  { %3786 = vmatmul.mubr.msk.f32.vlgmr.msra.gmra.mrb[18].mxu1 %vm946_vm5, %v2113_v35  ;;  %3499 = vmatmul.mubr.msk.f32.vlgmr.msra.gmra.mrb[20].mxu0 %vm946_vm5, %v2113_v35 }
 0xe5f   :  { %4225 = vmatpush1.bf16.msra.mxu0 %v4196_v50  ;;  %3804 = vmatprep.mubr.msk.f32.mxu1 %vm4587_vm4, %v4584_v0  ;;  %v5170_v50 = vld [vmem:[%s5301_s5] ss:$0 sm:$0xff] }
 0xe60   :  { %4227 = vmatprep.subr.bf16.mxu0 %v4198_v36  ;;  %2498 = vmatprep.mubr.f32.mxu0 %v4584_v0 }
 0xe63   :  { %4229 = vmatpush1.bf16.msra.mxu0 %v5040_v18 }
 0xe64   :  { %4231 = vmatprep.subr.bf16.mxu0 %v5042_v41 }
 0xe67   :  { %4233 = vmatpush1.bf16.msra.mxu0 %v5045_v45 }
 0xe68   :  { %4235 = vmatprep.subr.bf16.mxu0 %v5048_v38 }
 0xe6b   :  { %4237 = vmatpush1.bf16.msra.mxu0 %v5051_v51  ;;  %v2326_v51 = vld [vmem:[#allocation9] sm:$0xff] }
 0xe6c   :  { %4250 = vmatprep.subr.bf16.mxu0 %v4586_v10 }
 0xf31   :  { %v2198_v39 = vpop.f32.mrb[18].mxu1  ;;  %v2288_v5 = vpop.f32.mrb[20].mxu0 }
 0xf32   :  { %v2199_v13 = vadd.f32 %v4949_v52, %v2198_v39  ;;  %v3787_v16 = vpop.f32.mrb[19].mxu1  ;;  %v2290_v8 = vpop.f32.mrb[21].mxu0 }
 0xf33   :  { %v2295_v11 = vcombine.low %v2288_v5, %v2290_v8 }
 0xf34   :  { %v2202_v40 = vmax.f32 %v2199_v13, 0.0 }
 0xf35   :  { %v2297_v18 = vadd.f32 %v2295_v11, %v821_v23  ;;  %v4211_v23 = vpack.c.bf16 %v2327_v20, %v2326_v51 }
 0xf36   :  { %2204 = vst.msk [vmem:[#allocation3 + $0x14] sm:$0xf] %vm1143_vm6, %v2202_v40 }
 0xf37   :  { %2305 = vrot.lane.b32.xlu0 %v2297_v18, %s4580_s4  ;;  %v3500_v41 = vmul.f32 -1.442695, %v2297_v18  ;;  %4212 = vmatpush3.bf16.msra.mxu1 %v4211_v23 }
 0xf38   :  { %4213 = vmatprep.subr.bf16.mxu1 %v4586_v10 }
 0xf39   :  { %4409 = vpow2.f32 %v3500_v41 }
 0xf3b   :  { %4215 = vmatpush3.bf16.msra.mxu1 %v4214_v44 }
 0xf3c   :  { %4216 = vmatprep.subr.bf16.mxu1 %v4586_v10 }
 0xf3f   :  { %4218 = vmatpush3.bf16.msra.mxu1 %v4217_v25 }
 0xf40   :  { %4219 = vmatprep.subr.bf16.mxu1 %v4586_v10 }
 0xf43   :  { %v4410_v42 = vpop.eup %4409  ;;  %4221 = vmatpush3.bf16.msra.mxu1 %v4220_v9 }
 0xf44   :  { %v2301_v37 = vadd.f32 1.0, %v4410_v42  ;;  %4238 = vmatprep.subr.bf16.mxu1 %v4586_v10 }
 0xf46   :  { %4411 = vrcp.f32 %v2301_v37 }
 0xf50   :  { %v4412_v52 = vpop.eup %4411 }
 0xf51   :  { %v2310_v57 = vmul.f32 %v4412_v52, %v2104_v29  ;;  %v2319_v14 = vrot.slane %v4412_v52, 4 }
 0xfa9   :  { %v2306_v45 = vpop.permute.xlu0 %2305 }
 0xfaa   :  { %v2307_v38 = vrot.slane %v2306_v45, 4 }
 0xfac   :  { %4413 = vtanh.f32 %v2307_v38  ;;  %v5183_v38 = vld [vmem:[%s5303_s7] ss:$0 sm:$0xff] }
 0xfb6   :  { %v4414_v46 = vpop.eup %4413 }
 0xfb7   :  { %v2311_v48 = vmul.f32 %v4414_v46, %v4412_v52 }
 0xfb9   :  { %2313 = vrot.lane.b32.xlu1 %v2311_v48, %s4580_s4 }
0x102b   :  { %v2314_v58 = vpop.permute.xlu1 %2313 }
0x102c   :  { %v5104_v60 = vadd.f32 %v2314_v58, %v2310_v57  ;;  %v2731_v57 = vld [vmem:[#allocation3 + $0x4] sm:$0xf]  ;;  %v2935_v58 = vld [vmem:[#allocation3 + $0xc] sm:$0xf] }
0x102e   :  { %4415 = vtanh.f32 %v5104_v60 }
0x1038   :  { %v4416_v62 = vpop.eup %4415 }
0x1039   :  { %2322 = vrot.lane.b32.xlu0 %v4416_v62, %s4580_s4 }
0x10ab   :  { %v2323_v17 = vpop.permute.xlu0 %2322 }
0x10ac   :  { %v2325_v59 = vmul.f32 %v2323_v17, %v2319_v14 }
0x10ae   :  { %3805 = vmatmul.mubr.msk.f32.vlgmr.msra.gmra.mrb[20].mxu1 %vm946_vm5, %v2325_v59  ;;  %3503 = vmatmul.mubr.msk.f32.vlgmr.msra.gmra.mrb[22].mxu0 %vm946_vm5, %v2325_v59 }
0x10af   :  { %4252 = vmatpush3.bf16.msra.mxu0 %v5109_v24  ;;  %3842 = vmatprep.mubr.msk.f32.mxu0 %vm4587_vm4, %v4584_v0 }
0x10b0   :  { %4253 = vmatprep.subr.bf16.mxu0 %v4586_v10  ;;  %4240 = vmatpush3.bf16.msra.mxu1 %v4211_v23 }
0x10b1   :  { %4241 = vmatprep.subr.bf16.mxu1 %v4586_v10  ;;  %3823 = vmatprep.mubr.msk.f32.mxu1 %vm4587_vm4, %v4584_v0 }
0x10b3   :  { %4255 = vmatpush3.bf16.msra.mxu0 %v5114_v6 }
0x10b4   :  { %4256 = vmatprep.subr.bf16.mxu0 %v4586_v10  ;;  %4243 = vmatpush3.bf16.msra.mxu1 %v4214_v44 }
0x10b5   :  { %4244 = vmatprep.subr.bf16.mxu1 %v4586_v10 }
0x10b7   :  { %4258 = vmatpush3.bf16.msra.mxu0 %v5123_v32 }
0x10b8   :  { %4259 = vmatprep.subr.bf16.mxu0 %v4586_v10  ;;  %4246 = vmatpush3.bf16.msra.mxu1 %v4217_v25 }
0x10b9   :  { %4247 = vmatprep.subr.bf16.mxu1 %v4586_v10 }
0x10bb   :  { %4261 = vmatpush3.bf16.msra.mxu0 %v5128_v7 }
0x10bc   :  { %4274 = vmatprep.subr.bf16.mxu0 %v4586_v10  ;;  %4249 = vmatpush3.bf16.msra.mxu1 %v4220_v9 }
0x10bd   :  { %4262 = vmatprep.subr.bf16.mxu1 %v4586_v10 }
0x10be   :  { %3843 = vmatmul.mubr.msk.f32.vlgmr.msra.gmra.mrb[24].mxu0 %vm946_vm5, %v2629_v4 }
0x10bf   :  { %4276 = vmatpush3.bf16.msra.mxu0 %v5109_v24  ;;  %3880 = vmatprep.mubr.msk.f32.mxu0 %vm4587_vm4, %v4584_v0 }
0x10c0   :  { %4277 = vmatprep.subr.bf16.mxu0 %v4586_v10 }
0x10c3   :  { %4279 = vmatpush3.bf16.msra.mxu0 %v5114_v6 }
0x10c4   :  { %4280 = vmatprep.subr.bf16.mxu0 %v4586_v10 }
0x10c7   :  { %4282 = vmatpush3.bf16.msra.mxu0 %v5123_v32 }
0x10c8   :  { %4283 = vmatprep.subr.bf16.mxu0 %v4586_v10 }
0x10cb   :  { %4285 = vmatpush3.bf16.msra.mxu0 %v5128_v7 }
0x10cc   :  { %4298 = vmatprep.subr.bf16.mxu0 %v4586_v10 }
0x10ce   :  { %3881 = vmatmul.mubr.msk.f32.vlgmr.msra.gmra.mrb[26].mxu0 %vm946_vm5, %v2833_v19 }
0x10cf   :  { %4300 = vmatpush3.bf16.msra.mxu0 %v5109_v24  ;;  %3918 = vmatprep.mubr.msk.f32.mxu0 %vm4587_vm4, %v4584_v0 }
0x10d0   :  { %4301 = vmatprep.subr.bf16.mxu0 %v4586_v10 }
0x10d3   :  { %4303 = vmatpush3.bf16.msra.mxu0 %v5114_v6 }
0x10d4   :  { %4304 = vmatprep.subr.bf16.mxu0 %v4586_v10 }
0x10d7   :  { %4306 = vmatpush3.bf16.msra.mxu0 %v5123_v32 }
0x10d8   :  { %4307 = vmatprep.subr.bf16.mxu0 %v4586_v10 }
0x10db   :  { %4309 = vmatpush3.bf16.msra.mxu0 %v5128_v7 }
0x10dc   :  { %4322 = vmatprep.subr.bf16.mxu0 %v4586_v10 }
0x10de   :  { %3919 = vmatmul.mubr.msk.f32.vlgmr.msra.gmra.mrb[28].mxu0 %vm946_vm5, %v3037_v21 }
0x10df   :  { %4324 = vmatpush3.bf16.msra.mxu0 %v5109_v24  ;;  %3956 = vmatprep.mubr.msk.f32.mxu0 %vm4587_vm4, %v4584_v0 }
0x10e0   :  { %4325 = vmatprep.subr.bf16.mxu0 %v4586_v10 }
0x10e3   :  { %4327 = vmatpush3.bf16.msra.mxu0 %v5114_v6 }
0x10e4   :  { %4328 = vmatprep.subr.bf16.mxu0 %v4586_v10 }
0x10e7   :  { %4330 = vmatpush3.bf16.msra.mxu0 %v5123_v32 }
0x10e8   :  { %4331 = vmatprep.subr.bf16.mxu0 %v4586_v10 }
0x10eb   :  { %4333 = vmatpush3.bf16.msra.mxu0 %v5128_v7 }
0x1181   :  { %v2410_v36 = vpop.f32.mrb[20].mxu1  ;;  %v2500_v26 = vpop.f32.mrb[22].mxu0 }
0x1182   :  { %v2411_v27 = vadd.f32 %v5170_v50, %v2410_v36  ;;  %v3806_v29 = vpop.f32.mrb[21].mxu1  ;;  %v2502_v30 = vpop.f32.mrb[23].mxu0 }
0x1183   :  { %v2507_v33 = vcombine.low %v2500_v26, %v2502_v30 }
0x1184   :  { %v2414_v34 = vmax.f32 %v2411_v27, 0.0 }
0x1185   :  { %v2509_v35 = vadd.f32 %v2507_v33, %v925_v15 }
0x1186   :  { %2416 = vst.msk [vmem:[#allocation3 + $0x18] sm:$0xf] %vm1143_vm6, %v2414_v34 }
0x1187   :  { %2517 = vrot.lane.b32.xlu1 %v2509_v35, %s4580_s4  ;;  %v3504_v18 = vmul.f32 -1.442695, %v2509_v35 }
0x1189   :  { %4417 = vpow2.f32 %v3504_v18 }
0x118d   :  { %v3241_v39 = vld [vmem:[#allocation3 + $0x18] sm:$0xf] }
0x118e   :  { %3957 = vmatmul.mubr.msk.f32.vlgmr.msra.gmra.mrb[30].mxu0 %vm946_vm5, %v3241_v39 }
0x1191   :  { %v2714_v5 = vpop.f32.mrb[24].mxu0 }
0x1192   :  { %v3844_v13 = vpop.f32.mrb[25].mxu0  ;;  %v5186_v52 = vadd.f32 %v5183_v38, %v2714_v5 }
0x1193   :  { %v4418_v41 = vpop.eup %4417 }
0x1194   :  { %v2513_v42 = vadd.f32 1.0, %v4418_v41  ;;  %v2719_v48 = vsel %vm2718_vm7, %v5186_v52, -inf }
0x1196   :  { %4419 = vrcp.f32 %v2513_v42 }
0x11a0   :  { %v4420_v1 = vpop.eup %4419 }
0x11a1   :  { %v2918_v16 = vpop.f32.mrb[26].mxu0  ;;  %v2522_v23 = vmul.f32 %v4420_v1, %v5104_v60  ;;  %v2531_v49 = vrot.slane %v4420_v1, 4  ;;  %v3139_v60 = vld [vmem:[#allocation3 + $0x14] sm:$0xf] }
0x11a2   :  { %v3882_v8 = vpop.f32.mrb[27].mxu0  ;;  %v5189_v46 = vadd.f32 %v5183_v38, %v2918_v16 }
0x11a4   :  { %v2922_v51 = vsel %vm2718_vm7, %v5189_v46, -inf }
0x11b1   :  { %v3122_v11 = vpop.f32.mrb[28].mxu0 }
0x11b2   :  { %v3920_v40 = vpop.f32.mrb[29].mxu0  ;;  %v5200_v54 = vadd.f32 %v5183_v38, %v3122_v11 }
0x11b4   :  { %v3126_v25 = vsel %vm2718_vm7, %v5200_v54, -inf }
0x11f9   :  { %v2518_v37 = vpop.permute.xlu1 %2517 }
0x11fa   :  { %v2519_v12 = vrot.slane %v2518_v37, 4 }
0x11fc   :  { %4421 = vtanh.f32 %v2519_v12 }
0x1206   :  { %v4422_v15 = vpop.eup %4421 }
0x1207   :  { %v2523_v45 = vmul.f32 %v4422_v15, %v4420_v1 }
0x1209   :  { %2525 = vrot.lane.b32.xlu0 %v2523_v45, %s4580_s4 }
0x1228   :  { %2720 = vmax.xlane.f32.xlu0 %v2719_v48 }
0x122c   :  { %2923 = vmax.xlane.f32.xlu0 %v2922_v51 }
0x1261   :  { %v5195_v20 = vpop.f32.mrb[30].mxu0 }
0x1262   :  { %v3958_v22 = vpop.f32.mrb[31].mxu0 }
0x127b   :  { %v2526_v43 = vpop.permute.xlu0 %2525 }
0x127c   :  { %v2528_v44 = vadd.f32 %v2526_v43, %v2522_v23 }
0x127e   :  { %4423 = vtanh.f32 %v2528_v44 }
0x1288   :  { %v4424_v47 = vpop.eup %4423 }
0x1289   :  { %2534 = vrot.lane.b32.xlu1 %v4424_v47, %s4580_s4 }
0x12ad   :  { %3127 = vmax.xlane.f32.xlu1 %v3126_v25 }
0x12b5   :  { %v2721_v53 = vpop.xlane.xlu0 %2720 }
0x12fb   :  { %v2535_v55 = vpop.permute.xlu1 %2534 }
0x12fc   :  { %v2537_v9 = vmul.f32 %v2535_v55, %v2531_v49 }
0x12fe   :  { %3824 = vmatmul.mubr.msk.f32.vlgmr.msra.gmra.mrb[22].mxu1 %vm946_vm5, %v2537_v9 }
0x12ff   :  { %4264 = vmatpush3.bf16.msra.mxu1 %v5109_v24  ;;  %3861 = vmatprep.mubr.msk.f32.mxu1 %vm4587_vm4, %v4584_v0 }
0x1300   :  { %4265 = vmatprep.subr.bf16.mxu1 %v4586_v10 }
0x1303   :  { %4267 = vmatpush3.bf16.msra.mxu1 %v5114_v6 }
0x1304   :  { %4268 = vmatprep.subr.bf16.mxu1 %v4586_v10 }
0x1307   :  { %4270 = vmatpush3.bf16.msra.mxu1 %v5123_v32 }
0x1308   :  { %4271 = vmatprep.subr.bf16.mxu1 %v4586_v10 }
0x130b   :  { %4273 = vmatpush3.bf16.msra.mxu1 %v5128_v7 }
0x130c   :  { %4286 = vmatprep.subr.bf16.mxu1 %v4586_v10 }
0x130e   :  { %3862 = vmatmul.mubr.msk.f32.vlgmr.msra.gmra.mrb[24].mxu1 %vm946_vm5, %v2731_v57 }
0x130f   :  { %4288 = vmatpush3.bf16.msra.mxu1 %v5109_v24  ;;  %3899 = vmatprep.mubr.msk.f32.mxu1 %vm4587_vm4, %v4584_v0 }
0x1310   :  { %4289 = vmatprep.subr.bf16.mxu1 %v4586_v10 }
0x1313   :  { %4291 = vmatpush3.bf16.msra.mxu1 %v5114_v6 }
0x1314   :  { %4292 = vmatprep.subr.bf16.mxu1 %v4586_v10 }
0x1317   :  { %4294 = vmatpush3.bf16.msra.mxu1 %v5123_v32 }
0x1318   :  { %4295 = vmatprep.subr.bf16.mxu1 %v4586_v10 }
0x131b   :  { %4297 = vmatpush3.bf16.msra.mxu1 %v5128_v7 }
0x131c   :  { %4310 = vmatprep.subr.bf16.mxu1 %v4586_v10 }
0x131e   :  { %3900 = vmatmul.mubr.msk.f32.vlgmr.msra.gmra.mrb[26].mxu1 %vm946_vm5, %v2935_v58 }
0x131f   :  { %4312 = vmatpush3.bf16.msra.mxu1 %v5109_v24  ;;  %3937 = vmatprep.mubr.msk.f32.mxu1 %vm4587_vm4, %v4584_v0 }
0x1320   :  { %4313 = vmatprep.subr.bf16.mxu1 %v4586_v10 }
0x1323   :  { %4315 = vmatpush3.bf16.msra.mxu1 %v5114_v6 }
0x1324   :  { %4316 = vmatprep.subr.bf16.mxu1 %v4586_v10 }
0x1327   :  { %4318 = vmatpush3.bf16.msra.mxu1 %v5123_v32 }
0x1328   :  { %4319 = vmatprep.subr.bf16.mxu1 %v4586_v10 }
0x132b   :  { %4321 = vmatpush3.bf16.msra.mxu1 %v5128_v7 }
0x132c   :  { %4334 = vmatprep.subr.bf16.mxu1 %v4586_v10 }
0x132e   :  { %3938 = vmatmul.mubr.msk.f32.vlgmr.msra.gmra.mrb[28].mxu1 %vm946_vm5, %v3139_v60 }
0x132f   :  { %4336 = vmatpush3.bf16.msra.mxu1 %v5109_v24  ;;  %3975 = vmatprep.mubr.msk.f32.mxu1 %vm4587_vm4, %v4584_v0  ;;  %v2722_v0 = vsub.f32 %v5186_v52, %v2721_v53  ;;  %v2924_v24 = vpop.xlane.xlu0 %2923 }
0x1330   :  { %4337 = vmatprep.subr.bf16.mxu1 %v4586_v10  ;;  %v2925_v28 = vsub.f32 %v5189_v46, %v2924_v24 }
0x1331   :  { %v2723_v59 = vmul.f32 1.442695, %v2722_v0 }
0x1333   :  { %4339 = vmatpush3.bf16.msra.mxu1 %v5114_v6  ;;  %4425 = vpow2.f32 %v2723_v59 }
0x1334   :  { %4340 = vmatprep.subr.bf16.mxu1 %v4586_v10 }
0x1337   :  { %4342 = vmatpush3.bf16.msra.mxu1 %v5123_v32 }
0x1338   :  { %4343 = vmatprep.subr.bf16.mxu1 %v4586_v10  ;;  %v2926_v10 = vmul.f32 1.442695, %v2925_v28 }
0x133a   :  { %v3128_v63 = vpop.xlane.xlu1 %3127  ;;  %4427 = vpow2.f32 %v2926_v10 }
0x133b   :  { %4345 = vmatpush3.bf16.msra.mxu1 %v5128_v7  ;;  %v3129_v31 = vsub.f32 %v5200_v54, %v3128_v63  ;;  %v3327_v7 = vadd.f32 %v5183_v38, %v5195_v20 }
0x133d   :  { %v3130_v3 = vmul.f32 1.442695, %v3129_v31  ;;  %v3330_v19 = vsel %vm2718_vm7, %v3327_v7, -inf  ;;  %v4426_v21 = vpop.eup %4425 }
0x133f   :  { %4429 = vpow2.f32 %v3130_v3 }
0x1344   :  { %v4428_v36 = vpop.eup %4427 }
0x1345   :  { %v2928_v26 = vsel %vm2718_vm7, %v4428_v36, 0.0 }
0x1349   :  { %v4430_v27 = vpop.eup %4429 }
0x134a   :  { %v3132_v34 = vsel %vm2718_vm7, %v4430_v27, 0.0 }
0x13d1   :  { %v2622_v62 = vpop.f32.mrb[22].mxu1 }
0x13d2   :  { %v2623_v56 = vadd.f32 %v5170_v50, %v2622_v62  ;;  %v3825_v14 = vpop.f32.mrb[23].mxu1  ;;  %v2725_v50 = vsel %vm2718_vm7, %v4426_v21, 0.0 }
0x13d4   :  { %v2626_v17 = vmax.f32 %v2623_v56, 0.0 }
0x13d6   :  { %2628 = vst.msk [vmem:[#allocation3 + $0x1c] sm:$0xf] %vm1143_vm6, %v2626_v17 }
0x13dd   :  { %v3343_v6 = vld [vmem:[#allocation3 + $0x1c] sm:$0xf] }
0x13de   :  { %3976 = vmatmul.mubr.msk.f32.vlgmr.msra.gmra.mrb[30].mxu1 %vm946_vm5, %v3343_v6 }
0x13e1   :  { %v2816_v2 = vpop.f32.mrb[24].mxu1 }
0x13e2   :  { %v2817_v32 = vadd.f32 %v5183_v38, %v2816_v2  ;;  %v3863_v61 = vpop.f32.mrb[25].mxu1 }
0x13e4   :  { %v2820_v4 = vsel %vm2718_vm7, %v2817_v32, -inf }
0x13e5   :  { %2821 = vmax.xlane.f32.xlu1 %v2820_v4 }
0x13e9   :  { %3331 = vmax.xlane.f32.xlu1 %v3330_v19 }
0x13ed   :  { %2726 = vadd.xlane.f32.xlu1 %v2725_v50 }
0x13f1   :  { %2929 = vadd.xlane.f32.xlu1 %v2928_v26  ;;  %v3020_v29 = vpop.f32.mrb[26].mxu1 }
0x13f2   :  { %v3021_v30 = vadd.f32 %v5183_v38, %v3020_v29  ;;  %v3901_v33 = vpop.f32.mrb[27].mxu1 }
0x13f4   :  { %v3024_v35 = vsel %vm2718_vm7, %v3021_v30, -inf }
0x13f5   :  { %3133 = vadd.xlane.f32.xlu1 %v3132_v34  ;;  %3025 = vmax.xlane.f32.xlu0 %v3024_v35 }
0x1401   :  { %v3224_v39 = vpop.f32.mrb[28].mxu1 }
0x1402   :  { %v3225_v5 = vadd.f32 %v5183_v38, %v3224_v39  ;;  %v3939_v13 = vpop.f32.mrb[29].mxu1 }
0x1404   :  { %v3228_v16 = vsel %vm2718_vm7, %v3225_v5, -inf }
0x1405   :  { %3229 = vmax.xlane.f32.xlu0 %v3228_v16 }
0x1472   :  { %v2822_v8 = vpop.xlane.xlu1 %2821 }
0x1473   :  { %v2823_v20 = vsub.f32 %v2817_v32, %v2822_v8 }
0x1475   :  { %v2824_v23 = vmul.f32 1.442695, %v2823_v20 }
0x1476   :  { %v3332_v11 = vpop.xlane.xlu1 %3331 }
0x1477   :  { %v3333_v40 = vsub.f32 %v3327_v7, %v3332_v11 }
0x1479   :  { %v3334_v18 = vmul.f32 1.442695, %v3333_v40 }
0x147a   :  { %v2727_v41 = vpop.xlane.xlu1 %2726 }
0x147b   :  { %4431 = vpow2.f32 %v3334_v18 }
0x147c   :  { %4433 = vrcp.f32 %v2727_v41 }
0x147e   :  { %v2930_v42 = vpop.xlane.xlu1 %2929 }
0x147f   :  { %4435 = vrcp.f32 %v2930_v42 }
0x1482   :  { %v3134_v37 = vpop.xlane.xlu1 %3133  ;;  %v3026_v22 = vpop.xlane.xlu0 %3025 }
0x1483   :  { %4437 = vrcp.f32 %v3134_v37  ;;  %v3027_v43 = vsub.f32 %v3021_v30, %v3026_v22 }
0x1484   :  { %4439 = vpow2.f32 %v2824_v23 }
0x1485   :  { %v4432_v12 = vpop.eup %4431  ;;  %v3028_v47 = vmul.f32 1.442695, %v3027_v43 }
0x1486   :  { %v4434_v1 = vpop.eup %4433  ;;  %v3336_v15 = vsel %vm2718_vm7, %v4432_v12, 0.0 }
0x1487   :  { %v2729_v45 = vmul.f32 %v4434_v1, %v4426_v21  ;;  %3337 = vadd.xlane.f32.xlu1 %v3336_v15  ;;  %4441 = vpow2.f32 %v3028_v47 }
0x1489   :  { %v4436_v52 = vpop.eup %4435  ;;  %2730 = vst [vmem:[%s5304_s8] sm:$0xf] %v2729_v45 }
0x148a   :  { %v2932_v46 = vmul.f32 %v4436_v52, %v4428_v36 }
0x148c   :  { %3514 = vst [vmem:[%s5304_s8 + $0x8] sm:$0xf] %v2932_v46 }
0x148d   :  { %v4438_v48 = vpop.eup %4437 }
0x148e   :  { %v3136_v51 = vmul.f32 %v4438_v48, %v4430_v27  ;;  %v4440_v58 = vpop.eup %4439 }
0x148f   :  { %v2826_v60 = vsel %vm2718_vm7, %v4440_v58, 0.0 }
0x1490   :  { %3520 = vst [vmem:[%s5304_s8 + $0x10] sm:$0xf] %v3136_v51 }
0x1491   :  { %v4442_v62 = vpop.eup %4441 }
0x1492   :  { %v3230_v44 = vpop.xlane.xlu0 %3229  ;;  %v3030_v53 = vsel %vm2718_vm7, %v4442_v62, 0.0 }
0x1493   :  { %v3231_v54 = vsub.f32 %v3225_v5, %v3230_v44 }
0x1495   :  { %v3232_v25 = vmul.f32 1.442695, %v3231_v54 }
0x1497   :  { %4443 = vpow2.f32 %v3232_v25 }
0x14a1   :  { %v4444_v56 = vpop.eup %4443 }
0x14a2   :  { %v3234_v14 = vsel %vm2718_vm7, %v4444_v56, 0.0 }
0x14b1   :  { %v3428_v49 = vpop.f32.mrb[30].mxu1 }
0x14b2   :  { %v3429_v55 = vadd.f32 %v5183_v38, %v3428_v49  ;;  %v3977_v9 = vpop.f32.mrb[31].mxu1 }
0x14b4   :  { %v3432_v57 = vsel %vm2718_vm7, %v3429_v55, -inf }
0x14b5   :  { %3433 = vmax.xlane.f32.xlu0 %v3432_v57 }
0x14b9   :  { %2827 = vadd.xlane.f32.xlu0 %v2826_v60 }
0x14bd   :  { %3031 = vadd.xlane.f32.xlu0 %v3030_v53 }
0x14c1   :  { %3235 = vadd.xlane.f32.xlu0 %v3234_v14 }
0x1514   :  { %v3338_v17 = vpop.xlane.xlu1 %3337 }
0x1515   :  { %4445 = vrcp.f32 %v3338_v17 }
0x151f   :  { %v4446_v38 = vpop.eup %4445 }
0x1520   :  { %v3340_v0 = vmul.f32 %v4446_v38, %v4432_v12 }
0x1522   :  { %3526 = vst [vmem:[%s5304_s8 + $0x18] sm:$0xf] %v3340_v0 }
0x1542   :  { %v3434_v24 = vpop.xlane.xlu0 %3433 }
0x1543   :  { %v3435_v59 = vsub.f32 %v3429_v55, %v3434_v24 }
0x1545   :  { %v3436_v28 = vmul.f32 1.442695, %v3435_v59 }
0x1546   :  { %v2828_v63 = vpop.xlane.xlu0 %2827 }
0x1547   :  { %4447 = vpow2.f32 %v3436_v28 }
0x1548   :  { %4449 = vrcp.f32 %v2828_v63 }
0x154a   :  { %v3032_v6 = vpop.xlane.xlu0 %3031 }
0x154b   :  { %4451 = vrcp.f32 %v3032_v6 }
0x154e   :  { %v3236_v10 = vpop.xlane.xlu0 %3235 }
0x154f   :  { %4453 = vrcp.f32 %v3236_v10 }
0x1551   :  { %v4448_v31 = vpop.eup %4447 }
0x1552   :  { %v4450_v2 = vpop.eup %4449  ;;  %v3438_v32 = vsel %vm2718_vm7, %v4448_v31, 0.0 }
0x1553   :  { %v2830_v61 = vmul.f32 %v4450_v2, %v4440_v58  ;;  %3439 = vadd.xlane.f32.xlu0 %v3438_v32 }
0x1555   :  { %v4452_v3 = vpop.eup %4451  ;;  %3511 = vst [vmem:[%s5304_s8 + $0x4] sm:$0xf] %v2830_v61 }
0x1556   :  { %v3034_v7 = vmul.f32 %v4452_v3, %v4442_v62 }
0x1558   :  { %3517 = vst [vmem:[%s5304_s8 + $0xc] sm:$0xf] %v3034_v7 }
0x1559   :  { %v4454_v4 = vpop.eup %4453 }
0x155a   :  { %v3238_v19 = vmul.f32 %v4454_v4, %v4444_v56 }
0x155c   :  { %3523 = vst [vmem:[%s5304_s8 + $0x14] sm:$0xf] %v3238_v19 }
0x15e0   :  { %v3440_v21 = vpop.xlane.xlu0 %3439 }
0x15e1   :  { %4455 = vrcp.f32 %v3440_v21 }
0x15eb   :  { %v4456_v50 = vpop.eup %4455 }
0x15ec   :  { %v3442_v36 = vmul.f32 %v4456_v50, %v4448_v31 }
0x15ee   :  { %3529 = vst [vmem:[%s5304_s8 + $0x1c] sm:$0xf] %v3442_v36 }
0x15ef   :  { %3449 = vsyncpa [#allocation5], 1 }
0x15f0   :  { %3450 = vsyncpa [#allocation7], 1 }
0x15f1   :  { %3451 = vsyncpa [#allocation10], 1 }

</bundles_post_ra>
